<compile_context>
chip_gen: v7x
topology: tpu7x:2x2x1
jax: 0.10.0
libtpu: 0.0.40
codegen_flags: <defaults>
</compile_context>

<pallas_src>
import jax
import jax.numpy as jnp
from jax.experimental import pallas as pl
from jax.experimental.pallas import tpu as pltpu

PARAM_ORDER = (
    "w_emb", "b_emb",
    "w_ih_e", "w_hh_e", "b_e",
    "w_ih_d", "w_hh_d", "b_d",
    "w_out", "b_out",
    "w_struct", "b_struct",
)


def make_seq2seq_kernel(B, T_in, T_out):
    """Builds the kernel body with static B / T_in / T_out baked in."""

    def kernel(src_ref,                                   # [T_in*B, 2] time-major
               w_emb_ref, b_emb_ref,                      # [2,E], [1,E]
               w_ih_e_ref, w_hh_e_ref, b_e_ref,           # [E,4H] f32, [H,4H] bf16, [1,4H]
               w_ih_d_ref, b_d_ref,                       # [2,4H] f32, [1,4H]
               w_dec0_ref, b_struct_ref,                  # [H,4H+Sp] bf16, [1,Sp]
               w_dec_rec_ref, b_dec_rec_ref,              # [H,4H] bf16 (folded), [1,4H]
               w_out_ref, b_out_ref,                      # [H,128], [1,128]
               reg_ref, struct_ref,                       # [T_out*B,128], [B,Sp]
               h_hist_ref):                               # VMEM scratch [T_out*B, H]
        H = w_dec_rec_ref.shape[0]
        f32, bf16 = jnp.float32, jnp.bfloat16

        # Hoist recurrent-weight loads and bias broadcasts out of the unrolled
        # loops (JAX does not CSE broadcast_in_dim across iterations).
        w_hh_e = w_hh_e_ref[...]
        w_dec_rec = w_dec_rec_ref[...]
        b_dec_rec = jnp.broadcast_to(b_dec_rec_ref[...], (B, 4 * H))

        # ---- batched, non-recurrent precompute (off the serial recurrence) --
        src_all = src_ref[...]                                        # [T_in*B, 2]
        emb = jax.nn.relu(
            jnp.dot(src_all, w_emb_ref[...], preferred_element_type=f32)
            + b_emb_ref[...])                                         # [T_in*B, E]
        # Encoder input projection with b_e already folded in (one batched add
        # instead of one dependent VPU add per encoder step).
        x_proj = (jnp.dot(emb, w_ih_e_ref[...], preferred_element_type=f32)
                  + b_e_ref[...])                                     # [T_in*B, 4H]
        # Decoder step-0 input projection: depends only on src, so it hides
        # behind the encoder recurrence instead of sitting at the handoff.
        dec_in0 = src_all[(T_in - 1) * B:, :]                         # [B, 2]
        g0_in = (jnp.dot(dec_in0, w_ih_d_ref[...], preferred_element_type=f32)
                 + b_d_ref[...])                                      # [B, 4H]

        # Gate layout (i | f | o | g); i/f/o columns pre-scaled by 0.5 host-side
        # so sigmoid(x) = 0.5*tanh(x/2) + 0.5 -> ONE EUP push for all gates.
        def apply_gates(gates, c):
            t = jnp.tanh(gates)                           # single EUP push [B,4H]
            ifo = 0.5 * t[:, :3 * H] + 0.5                # sigmoid reconstruction (VPU)
            i = ifo[:, 0 * H:1 * H]
            f = ifo[:, 1 * H:2 * H]
            o = ifo[:, 2 * H:3 * H]
            g = t[:, 3 * H:]
            c_new = f * c + i * g
            h_new = o * jnp.tanh(c_new)
            return h_new, c_new

        h = jnp.zeros((B, H), f32)
        c = jnp.zeros((B, H), f32)

        # ---- encoder recurrence: one bf16 matmul + gates per step ------------
        for ei in range(T_in):
            gates = (x_proj[ei * B:(ei + 1) * B, :]
                     + jnp.dot(h.astype(bf16), w_hh_e, preferred_element_type=f32))
            h, c = apply_gates(gates, c)

        # ---- encoder -> decoder handoff ---------------------------------------
        # One MXU push over [H, 4H+Sp] produces BOTH the decoder step-0 hidden
        # contribution and the structure-decoder logits (encoder's final h).
        hs0 = jnp.dot(h.astype(bf16), w_dec0_ref[...], preferred_element_type=f32)
        struct_ref[...] = hs0[:, 4 * H:] + b_struct_ref[...]
        h, c = apply_gates(g0_in + hs0[:, :4 * H], c)
        h_hist_ref[0:B, :] = h

        # ---- decoder rollout: feedback projection folded into w_dec_rec ------
        for t in range(1, T_out):
            gates = (jnp.dot(h.astype(bf16), w_dec_rec, preferred_element_type=f32)
                     + b_dec_rec)
            h, c = apply_gates(gates, c)
            h_hist_ref[t * B:(t + 1) * B, :] = h

        # Output projection batched over all rollout steps: one matmul, one
        # lane-dense (128-wide) unmasked store.
        reg_ref[...] = (
            jnp.dot(h_hist_ref[...], w_out_ref[...], preferred_element_type=f32)
            + b_out_ref[...])

    return kernel


def seq2seq_forward(src, trg, params, rollout_length, struct_dim):
    """Whole encoder + decoder rollout in one Pallas kernel invocation.

    Everything fits in VMEM at these sizes, so whole-array VMEM blocks with no
    grid; the sequential recurrence lives inside the kernel body.
    """
    assert trg.shape[1] == rollout_length and trg.shape[2] == 2
    B, T_in, _ = src.shape
    T_out = rollout_length
    H = params["w_hh_e"].shape[0]
    # 4H must be lane-aligned so the in-kernel gate / struct slices stay cheap.
    assert H % 32 == 0, "hidden size must be a multiple of 32"
    S = struct_dim
    S_pad = ((S + 127) // 128) * 128
    O_pad = 128

    # ---- host-side parameter prep (done once per call; cheap) ---------------
    def perm_gates(w):    # (i, f, g, o) -> (i, f, o, g)
        return jnp.concatenate(
            [w[:, 0:2 * H], w[:, 3 * H:4 * H], w[:, 2 * H:3 * H]], axis=-1)

    def scale_ifo(w):     # pre-scale i/f/o columns: sigmoid(x)=0.5*tanh(x/2)+0.5
        return jnp.concatenate([0.5 * w[:, :3 * H], w[:, 3 * H:]], axis=-1)

    def pad_cols(a, n):
        return jnp.pad(a, ((0, 0), (0, n - a.shape[1])))

    w_ih_e = perm_gates(params["w_ih_e"])
    w_hh_e = perm_gates(params["w_hh_e"])
    b_e = perm_gates(params["b_e"])
    w_ih_d = perm_gates(params["w_ih_d"])
    w_hh_d = perm_gates(params["w_hh_d"])
    b_d = perm_gates(params["b_d"])
    w_out = params["w_out"]
    b_out = params["b_out"]

    # Fold the decoder feedback projection into the recurrent weight. Exact at
    # inference because dec_in_{t+1} = h_t @ w_out + b_out (no teacher forcing).
    w_dec_rec = w_hh_d + w_out @ w_ih_d                               # [H, 4H]
    b_dec_rec = b_d + b_out @ w_ih_d                                  # [1, 4H]

    # Pre-scale i/f/o columns for the single-tanh gate trick (exact algebra).
    w_ih_e, w_hh_e, b_e = scale_ifo(w_ih_e), scale_ifo(w_hh_e), scale_ifo(b_e)
    w_ih_d, b_d = scale_ifo(w_ih_d), scale_ifo(b_d)
    w_hh_d = scale_ifo(w_hh_d)
    w_dec_rec, b_dec_rec = scale_ifo(w_dec_rec), scale_ifo(b_dec_rec)

    # Lane-dense output weights (unmasked 128-wide stores).
    w_out_pad, b_out_pad = pad_cols(w_out, O_pad), pad_cols(b_out, O_pad)
    w_struct_pad = pad_cols(params["w_struct"], S_pad)
    b_struct_pad = pad_cols(params["b_struct"], S_pad)

    # Handoff fold [w_hh_d | w_struct]; bf16 operands for the recurrent path
    # (f32 accumulation inside the kernel).
    w_dec0 = jnp.concatenate([w_hh_d, w_struct_pad], axis=-1).astype(jnp.bfloat16)
    w_hh_e_bf = w_hh_e.astype(jnp.bfloat16)
    w_dec_rec_bf = w_dec_rec.astype(jnp.bfloat16)

    # Time-major, lane-/sublane-friendly src slab: [T_in*B, 2].
    src_tb = jnp.transpose(src, (1, 0, 2)).reshape(T_in * B, 2)

    vmem = pl.BlockSpec(memory_space=pltpu.MemorySpace.VMEM)
    out_shapes = (
        jax.ShapeDtypeStruct((T_out * B, O_pad), jnp.float32),        # 'reg' (time-major, padded)
        jax.ShapeDtypeStruct((B, S_pad), jnp.float32),                # 'struct_reg' (padded)
    )
    reg_tm, struct_pad_out = pl.pallas_call(
        make_seq2seq_kernel(B, T_in, T_out),
        out_shape=out_shapes,
        in_specs=[vmem] * 14,
        out_specs=(vmem, vmem),
        scratch_shapes=[pltpu.VMEM((T_out * B, H), jnp.float32)],
    )(src_tb,
      params["w_emb"], params["b_emb"],
      w_ih_e, w_hh_e_bf, b_e,
      w_ih_d, b_d,
      w_dec0, b_struct_pad,
      w_dec_rec_bf, b_dec_rec,
      w_out_pad, b_out_pad)

    # Back to the module's [B, T_out, 2] layout; drop lane padding.
    reg = jnp.transpose(reg_tm[:, :2].reshape(T_out, B, 2), (1, 0, 2))
    return {"reg": reg, "struct_reg": struct_pad_out[:, :S]}


def seq2seq_reference(src, params, rollout_length):
    """Pure-JAX step-by-step reference (mirrors the PyTorch module at eval)."""
    B, T_in, _ = src.shape
    H = params["w_hh_e"].shape[0]

    def lstm_cell(x, h, c, w_ih, w_hh, b):                # gate order (i, f, g, o)
        gates = x @ w_ih + h @ w_hh + b
        i = jax.nn.sigmoid(gates[:, 0 * H:1 * H])
        f = jax.nn.sigmoid(gates[:, 1 * H:2 * H])
        g = jnp.tanh(gates[:, 2 * H:3 * H])
        o = jax.nn.sigmoid(gates[:, 3 * H:4 * H])
        c = f * c + i * g
        return o * jnp.tanh(c), c

    emb = jax.nn.relu(src @ params["w_emb"] + params["b_emb"])
    h = jnp.zeros((B, H), jnp.float32)
    c = jnp.zeros((B, H), jnp.float32)
    for t in range(T_in):
        h, c = lstm_cell(emb[:, t, :], h, c,
                         params["w_ih_e"], params["w_hh_e"], params["b_e"])
    struct = h @ params["w_struct"] + params["b_struct"]
    dec_in = src[:, -1, :2]
    regs = []
    for _ in range(rollout_length):
        h, c = lstm_cell(dec_in, h, c,
                         params["w_ih_d"], params["w_hh_d"], params["b_d"])
        out = h @ params["w_out"] + params["b_out"]
        regs.append(out)
        dec_in = out
    return {"reg": jnp.stack(regs, axis=1), "struct_reg": struct}


def init_params(key, emb_dim, hidden, struct_dim):
    ks = jax.random.split(key, len(PARAM_ORDER))

    def u(k, shape, scale=0.1):
        return scale * jax.random.uniform(k, shape, jnp.float32, -1.0, 1.0)

    shapes = {
        "w_emb": (2, emb_dim),            "b_emb": (1, emb_dim),
        "w_ih_e": (emb_dim, 4 * hidden),  "w_hh_e": (hidden, 4 * hidden),
        "b_e": (1, 4 * hidden),
        "w_ih_d": (2, 4 * hidden),        "w_hh_d": (hidden, 4 * hidden),
        "b_d": (1, 4 * hidden),
        "w_out": (hidden, 2),             "b_out": (1, 2),
        "w_struct": (hidden, struct_dim), "b_struct": (1, struct_dim),
    }
    return {name: u(k, shapes[name]) for name, k in zip(PARAM_ORDER, ks)}


if __name__ == "__main__":
    key = jax.random.PRNGKey(0)
    B, T_IN, T_OUT = 8, 8, 8        # batch, observed length, rollout_length
    E, H, S = 32, 32, 16            # embedding dim, LSTM hidden, struct-decoder dim

    k_src, k_trg, k_par = jax.random.split(key, 3)
    src = jax.random.normal(k_src, (B, T_IN, 2), jnp.float32)
    trg = jax.random.normal(k_trg, (B, T_OUT, 2), jnp.float32)  # only its shape matters at eval
    params = init_params(k_par, E, H, S)

    out = seq2seq_forward(src, trg, params, rollout_length=T_OUT, struct_dim=S)
    out = jax.tree_util.tree_map(jax.block_until_ready, out)

    assert out["reg"].shape == (B, T_OUT, 2)
    assert out["struct_reg"].shape == (B, S)
    assert jnp.all(jnp.isfinite(out["reg"])) and jnp.all(jnp.isfinite(out["struct_reg"]))

    # Tolerance check against the pure-JAX reference (bf16 MXU operands + the
    # algebraic refolds change f32 rounding order; not bit-exact by design).
    ref = seq2seq_reference(src, params, T_OUT)
    assert float(jnp.max(jnp.abs(out["reg"] - ref["reg"]))) < 5e-2
    assert float(jnp.max(jnp.abs(out["struct_reg"] - ref["struct_reg"]))) < 5e-2

    print("KERNEL_OK")
</pallas_src>

<mosaic_0001>
module attributes {stable_mosaic.version = 11 : i64} {
  func.func @kernel(%arg0: memref<64x2xf32, #tpu.memory_space<vmem>>, %arg1: memref<2x32xf32, #tpu.memory_space<vmem>>, %arg2: memref<1x32xf32, #tpu.memory_space<vmem>>, %arg3: memref<32x128xf32, #tpu.memory_space<vmem>>, %arg4: memref<32x128xbf16, #tpu.memory_space<vmem>>, %arg5: memref<1x128xf32, #tpu.memory_space<vmem>>, %arg6: memref<2x128xf32, #tpu.memory_space<vmem>>, %arg7: memref<1x128xf32, #tpu.memory_space<vmem>>, %arg8: memref<32x256xbf16, #tpu.memory_space<vmem>>, %arg9: memref<1x128xf32, #tpu.memory_space<vmem>>, %arg10: memref<32x128xbf16, #tpu.memory_space<vmem>>, %arg11: memref<1x128xf32, #tpu.memory_space<vmem>>, %arg12: memref<32x128xf32, #tpu.memory_space<vmem>>, %arg13: memref<1x128xf32, #tpu.memory_space<vmem>>, %arg14: memref<64x128xf32, #tpu.memory_space<vmem>>, %arg15: memref<8x128xf32, #tpu.memory_space<vmem>>, %arg16: memref<64x32xf32, #tpu.memory_space<vmem>>) attributes {dimension_semantics = [], scalar_prefetch = 0 : i64, scratch_operands = 1 : i64, tpu.core_type = #tpu.core_type<tc>} {
    %c0 = arith.constant 0 : index
    %c0_0 = arith.constant 0 : index
    %0 = vector.load %arg4[%c0, %c0_0] : memref<32x128xbf16, #tpu.memory_space<vmem>>, vector<32x128xbf16>
    %c0_1 = arith.constant 0 : index
    %c0_2 = arith.constant 0 : index
    %1 = vector.load %arg10[%c0_1, %c0_2] : memref<32x128xbf16, #tpu.memory_space<vmem>>, vector<32x128xbf16>
    %c0_3 = arith.constant 0 : index
    %c0_4 = arith.constant 0 : index
    %2 = vector.load %arg11[%c0_3, %c0_4] : memref<1x128xf32, #tpu.memory_space<vmem>>, vector<1x128xf32>
    %3 = vector.shape_cast %2 : vector<1x128xf32> to vector<1x128xf32>
    %4 = vector.broadcast %3 : vector<1x128xf32> to vector<8x128xf32>
    %c0_5 = arith.constant 0 : index
    %c0_6 = arith.constant 0 : index
    %5 = vector.load %arg0[%c0_5, %c0_6] : memref<64x2xf32, #tpu.memory_space<vmem>>, vector<64x2xf32>
    %c0_7 = arith.constant 0 : index
    %c0_8 = arith.constant 0 : index
    %6 = vector.load %arg1[%c0_7, %c0_8] : memref<2x32xf32, #tpu.memory_space<vmem>>, vector<2x32xf32>
    %cst = arith.constant dense<0.000000e+00> : vector<64x32xf32>
    %7 = tpu.matmul %5, %6, %cst {dimension_numbers = #tpu.dot_dimension_numbers<[1], [0], [0], [1], [0, 0, 1, 1], [], []>} : vector<64x2xf32>, vector<2x32xf32>, vector<64x32xf32> -> vector<64x32xf32>
    %c0_9 = arith.constant 0 : index
    %c0_10 = arith.constant 0 : index
    %8 = vector.load %arg2[%c0_9, %c0_10] : memref<1x32xf32, #tpu.memory_space<vmem>>, vector<1x32xf32>
    %9 = vector.broadcast %8 : vector<1x32xf32> to vector<64x32xf32>
    %10 = arith.addf %7, %9 : vector<64x32xf32>
    %cst_11 = arith.constant 0.000000e+00 : f32
    %11 = vector.broadcast %cst_11 : f32 to vector<64x32xf32>
    %12 = arith.maximumf %10, %11 : vector<64x32xf32>
    %c0_12 = arith.constant 0 : index
    %c0_13 = arith.constant 0 : index
    %13 = vector.load %arg3[%c0_12, %c0_13] : memref<32x128xf32, #tpu.memory_space<vmem>>, vector<32x128xf32>
    %cst_14 = arith.constant dense<0.000000e+00> : vector<64x128xf32>
    %14 = tpu.matmul %12, %13, %cst_14 {dimension_numbers = #tpu.dot_dimension_numbers<[1], [0], [0], [1], [0, 0, 1, 1], [], []>} : vector<64x32xf32>, vector<32x128xf32>, vector<64x128xf32> -> vector<64x128xf32>
    %c0_15 = arith.constant 0 : index
    %c0_16 = arith.constant 0 : index
    %15 = vector.load %arg5[%c0_15, %c0_16] : memref<1x128xf32, #tpu.memory_space<vmem>>, vector<1x128xf32>
    %16 = vector.broadcast %15 : vector<1x128xf32> to vector<64x128xf32>
    %17 = arith.addf %14, %16 : vector<64x128xf32>
    %18 = vector.extract_strided_slice %5 {offsets = [56, 0], sizes = [8, 2], strides = [1, 1]} : vector<64x2xf32> to vector<8x2xf32>
    %c0_17 = arith.constant 0 : index
    %c0_18 = arith.constant 0 : index
    %19 = vector.load %arg6[%c0_17, %c0_18] : memref<2x128xf32, #tpu.memory_space<vmem>>, vector<2x128xf32>
    %cst_19 = arith.constant dense<0.000000e+00> : vector<8x128xf32>
    %20 = tpu.matmul %18, %19, %cst_19 {dimension_numbers = #tpu.dot_dimension_numbers<[1], [0], [0], [1], [0, 0, 1, 1], [], []>} : vector<8x2xf32>, vector<2x128xf32>, vector<8x128xf32> -> vector<8x128xf32>
    %c0_20 = arith.constant 0 : index
    %c0_21 = arith.constant 0 : index
    %21 = vector.load %arg7[%c0_20, %c0_21] : memref<1x128xf32, #tpu.memory_space<vmem>>, vector<1x128xf32>
    %22 = vector.broadcast %21 : vector<1x128xf32> to vector<8x128xf32>
    %23 = arith.addf %20, %22 : vector<8x128xf32>
    %cst_22 = arith.constant 0.000000e+00 : f32
    %24 = vector.broadcast %cst_22 : f32 to vector<8x32xf32>
    %cst_23 = arith.constant 0.000000e+00 : f32
    %25 = vector.broadcast %cst_23 : f32 to vector<8x32xf32>
    %26 = vector.extract_strided_slice %17 {offsets = [0, 0], sizes = [8, 128], strides = [1, 1]} : vector<64x128xf32> to vector<8x128xf32>
    %27 = arith.truncf %24 : vector<8x32xf32> to vector<8x32xbf16>
    %cst_24 = arith.constant dense<0.000000e+00> : vector<8x128xf32>
    %28 = tpu.matmul %27, %0, %cst_24 {dimension_numbers = #tpu.dot_dimension_numbers<[1], [0], [0], [1], [0, 0, 1, 1], [], []>} : vector<8x32xbf16>, vector<32x128xbf16>, vector<8x128xf32> -> vector<8x128xf32>
    %29 = arith.addf %26, %28 : vector<8x128xf32>
    %30 = math.tanh %29 : vector<8x128xf32>
    %31 = vector.extract_strided_slice %30 {offsets = [0, 0], sizes = [8, 96], strides = [1, 1]} : vector<8x128xf32> to vector<8x96xf32>
    %cst_25 = arith.constant 5.000000e-01 : f32
    %32 = vector.broadcast %cst_25 : f32 to vector<8x96xf32>
    %33 = arith.mulf %32, %31 : vector<8x96xf32>
    %cst_26 = arith.constant 5.000000e-01 : f32
    %34 = vector.broadcast %cst_26 : f32 to vector<8x96xf32>
    %35 = arith.addf %33, %34 : vector<8x96xf32>
    %36 = vector.extract_strided_slice %35 {offsets = [0, 0], sizes = [8, 32], strides = [1, 1]} : vector<8x96xf32> to vector<8x32xf32>
    %37 = vector.extract_strided_slice %35 {offsets = [0, 32], sizes = [8, 32], strides = [1, 1]} : vector<8x96xf32> to vector<8x32xf32>
    %38 = vector.extract_strided_slice %35 {offsets = [0, 64], sizes = [8, 32], strides = [1, 1]} : vector<8x96xf32> to vector<8x32xf32>
    %39 = vector.extract_strided_slice %30 {offsets = [0, 96], sizes = [8, 32], strides = [1, 1]} : vector<8x128xf32> to vector<8x32xf32>
    %40 = arith.mulf %37, %25 : vector<8x32xf32>
    %41 = arith.mulf %36, %39 : vector<8x32xf32>
    %42 = arith.addf %40, %41 : vector<8x32xf32>
    %43 = math.tanh %42 : vector<8x32xf32>
    %44 = arith.mulf %38, %43 : vector<8x32xf32>
    %45 = vector.extract_strided_slice %17 {offsets = [8, 0], sizes = [8, 128], strides = [1, 1]} : vector<64x128xf32> to vector<8x128xf32>
    %46 = arith.truncf %44 : vector<8x32xf32> to vector<8x32xbf16>
    %cst_27 = arith.constant dense<0.000000e+00> : vector<8x128xf32>
    %47 = tpu.matmul %46, %0, %cst_27 {dimension_numbers = #tpu.dot_dimension_numbers<[1], [0], [0], [1], [0, 0, 1, 1], [], []>} : vector<8x32xbf16>, vector<32x128xbf16>, vector<8x128xf32> -> vector<8x128xf32>
    %48 = arith.addf %45, %47 : vector<8x128xf32>
    %49 = math.tanh %48 : vector<8x128xf32>
    %50 = vector.extract_strided_slice %49 {offsets = [0, 0], sizes = [8, 96], strides = [1, 1]} : vector<8x128xf32> to vector<8x96xf32>
    %cst_28 = arith.constant 5.000000e-01 : f32
    %51 = vector.broadcast %cst_28 : f32 to vector<8x96xf32>
    %52 = arith.mulf %51, %50 : vector<8x96xf32>
    %cst_29 = arith.constant 5.000000e-01 : f32
    %53 = vector.broadcast %cst_29 : f32 to vector<8x96xf32>
    %54 = arith.addf %52, %53 : vector<8x96xf32>
    %55 = vector.extract_strided_slice %54 {offsets = [0, 0], sizes = [8, 32], strides = [1, 1]} : vector<8x96xf32> to vector<8x32xf32>
    %56 = vector.extract_strided_slice %54 {offsets = [0, 32], sizes = [8, 32], strides = [1, 1]} : vector<8x96xf32> to vector<8x32xf32>
    %57 = vector.extract_strided_slice %54 {offsets = [0, 64], sizes = [8, 32], strides = [1, 1]} : vector<8x96xf32> to vector<8x32xf32>
    %58 = vector.extract_strided_slice %49 {offsets = [0, 96], sizes = [8, 32], strides = [1, 1]} : vector<8x128xf32> to vector<8x32xf32>
    %59 = arith.mulf %56, %42 : vector<8x32xf32>
    %60 = arith.mulf %55, %58 : vector<8x32xf32>
    %61 = arith.addf %59, %60 : vector<8x32xf32>
    %62 = math.tanh %61 : vector<8x32xf32>
    %63 = arith.mulf %57, %62 : vector<8x32xf32>
    %64 = vector.extract_strided_slice %17 {offsets = [16, 0], sizes = [8, 128], strides = [1, 1]} : vector<64x128xf32> to vector<8x128xf32>
    %65 = arith.truncf %63 : vector<8x32xf32> to vector<8x32xbf16>
    %cst_30 = arith.constant dense<0.000000e+00> : vector<8x128xf32>
    %66 = tpu.matmul %65, %0, %cst_30 {dimension_numbers = #tpu.dot_dimension_numbers<[1], [0], [0], [1], [0, 0, 1, 1], [], []>} : vector<8x32xbf16>, vector<32x128xbf16>, vector<8x128xf32> -> vector<8x128xf32>
    %67 = arith.addf %64, %66 : vector<8x128xf32>
    %68 = math.tanh %67 : vector<8x128xf32>
    %69 = vector.extract_strided_slice %68 {offsets = [0, 0], sizes = [8, 96], strides = [1, 1]} : vector<8x128xf32> to vector<8x96xf32>
    %cst_31 = arith.constant 5.000000e-01 : f32
    %70 = vector.broadcast %cst_31 : f32 to vector<8x96xf32>
    %71 = arith.mulf %70, %69 : vector<8x96xf32>
    %cst_32 = arith.constant 5.000000e-01 : f32
    %72 = vector.broadcast %cst_32 : f32 to vector<8x96xf32>
    %73 = arith.addf %71, %72 : vector<8x96xf32>
    %74 = vector.extract_strided_slice %73 {offsets = [0, 0], sizes = [8, 32], strides = [1, 1]} : vector<8x96xf32> to vector<8x32xf32>
    %75 = vector.extract_strided_slice %73 {offsets = [0, 32], sizes = [8, 32], strides = [1, 1]} : vector<8x96xf32> to vector<8x32xf32>
    %76 = vector.extract_strided_slice %73 {offsets = [0, 64], sizes = [8, 32], strides = [1, 1]} : vector<8x96xf32> to vector<8x32xf32>
    %77 = vector.extract_strided_slice %68 {offsets = [0, 96], sizes = [8, 32], strides = [1, 1]} : vector<8x128xf32> to vector<8x32xf32>
    %78 = arith.mulf %75, %61 : vector<8x32xf32>
    %79 = arith.mulf %74, %77 : vector<8x32xf32>
    %80 = arith.addf %78, %79 : vector<8x32xf32>
    %81 = math.tanh %80 : vector<8x32xf32>
    %82 = arith.mulf %76, %81 : vector<8x32xf32>
    %83 = vector.extract_strided_slice %17 {offsets = [24, 0], sizes = [8, 128], strides = [1, 1]} : vector<64x128xf32> to vector<8x128xf32>
    %84 = arith.truncf %82 : vector<8x32xf32> to vector<8x32xbf16>
    %cst_33 = arith.constant dense<0.000000e+00> : vector<8x128xf32>
    %85 = tpu.matmul %84, %0, %cst_33 {dimension_numbers = #tpu.dot_dimension_numbers<[1], [0], [0], [1], [0, 0, 1, 1], [], []>} : vector<8x32xbf16>, vector<32x128xbf16>, vector<8x128xf32> -> vector<8x128xf32>
    %86 = arith.addf %83, %85 : vector<8x128xf32>
    %87 = math.tanh %86 : vector<8x128xf32>
    %88 = vector.extract_strided_slice %87 {offsets = [0, 0], sizes = [8, 96], strides = [1, 1]} : vector<8x128xf32> to vector<8x96xf32>
    %cst_34 = arith.constant 5.000000e-01 : f32
    %89 = vector.broadcast %cst_34 : f32 to vector<8x96xf32>
    %90 = arith.mulf %89, %88 : vector<8x96xf32>
    %cst_35 = arith.constant 5.000000e-01 : f32
    %91 = vector.broadcast %cst_35 : f32 to vector<8x96xf32>
    %92 = arith.addf %90, %91 : vector<8x96xf32>
    %93 = vector.extract_strided_slice %92 {offsets = [0, 0], sizes = [8, 32], strides = [1, 1]} : vector<8x96xf32> to vector<8x32xf32>
    %94 = vector.extract_strided_slice %92 {offsets = [0, 32], sizes = [8, 32], strides = [1, 1]} : vector<8x96xf32> to vector<8x32xf32>
    %95 = vector.extract_strided_slice %92 {offsets = [0, 64], sizes = [8, 32], strides = [1, 1]} : vector<8x96xf32> to vector<8x32xf32>
    %96 = vector.extract_strided_slice %87 {offsets = [0, 96], sizes = [8, 32], strides = [1, 1]} : vector<8x128xf32> to vector<8x32xf32>
    %97 = arith.mulf %94, %80 : vector<8x32xf32>
    %98 = arith.mulf %93, %96 : vector<8x32xf32>
    %99 = arith.addf %97, %98 : vector<8x32xf32>
    %100 = math.tanh %99 : vector<8x32xf32>
    %101 = arith.mulf %95, %100 : vector<8x32xf32>
    %102 = vector.extract_strided_slice %17 {offsets = [32, 0], sizes = [8, 128], strides = [1, 1]} : vector<64x128xf32> to vector<8x128xf32>
    %103 = arith.truncf %101 : vector<8x32xf32> to vector<8x32xbf16>
    %cst_36 = arith.constant dense<0.000000e+00> : vector<8x128xf32>
    %104 = tpu.matmul %103, %0, %cst_36 {dimension_numbers = #tpu.dot_dimension_numbers<[1], [0], [0], [1], [0, 0, 1, 1], [], []>} : vector<8x32xbf16>, vector<32x128xbf16>, vector<8x128xf32> -> vector<8x128xf32>
    %105 = arith.addf %102, %104 : vector<8x128xf32>
    %106 = math.tanh %105 : vector<8x128xf32>
    %107 = vector.extract_strided_slice %106 {offsets = [0, 0], sizes = [8, 96], strides = [1, 1]} : vector<8x128xf32> to vector<8x96xf32>
    %cst_37 = arith.constant 5.000000e-01 : f32
    %108 = vector.broadcast %cst_37 : f32 to vector<8x96xf32>
    %109 = arith.mulf %108, %107 : vector<8x96xf32>
    %cst_38 = arith.constant 5.000000e-01 : f32
    %110 = vector.broadcast %cst_38 : f32 to vector<8x96xf32>
    %111 = arith.addf %109, %110 : vector<8x96xf32>
    %112 = vector.extract_strided_slice %111 {offsets = [0, 0], sizes = [8, 32], strides = [1, 1]} : vector<8x96xf32> to vector<8x32xf32>
    %113 = vector.extract_strided_slice %111 {offsets = [0, 32], sizes = [8, 32], strides = [1, 1]} : vector<8x96xf32> to vector<8x32xf32>
    %114 = vector.extract_strided_slice %111 {offsets = [0, 64], sizes = [8, 32], strides = [1, 1]} : vector<8x96xf32> to vector<8x32xf32>
    %115 = vector.extract_strided_slice %106 {offsets = [0, 96], sizes = [8, 32], strides = [1, 1]} : vector<8x128xf32> to vector<8x32xf32>
    %116 = arith.mulf %113, %99 : vector<8x32xf32>
    %117 = arith.mulf %112, %115 : vector<8x32xf32>
    %118 = arith.addf %116, %117 : vector<8x32xf32>
    %119 = math.tanh %118 : vector<8x32xf32>
    %120 = arith.mulf %114, %119 : vector<8x32xf32>
    %121 = vector.extract_strided_slice %17 {offsets = [40, 0], sizes = [8, 128], strides = [1, 1]} : vector<64x128xf32> to vector<8x128xf32>
    %122 = arith.truncf %120 : vector<8x32xf32> to vector<8x32xbf16>
    %cst_39 = arith.constant dense<0.000000e+00> : vector<8x128xf32>
    %123 = tpu.matmul %122, %0, %cst_39 {dimension_numbers = #tpu.dot_dimension_numbers<[1], [0], [0], [1], [0, 0, 1, 1], [], []>} : vector<8x32xbf16>, vector<32x128xbf16>, vector<8x128xf32> -> vector<8x128xf32>
    %124 = arith.addf %121, %123 : vector<8x128xf32>
    %125 = math.tanh %124 : vector<8x128xf32>
    %126 = vector.extract_strided_slice %125 {offsets = [0, 0], sizes = [8, 96], strides = [1, 1]} : vector<8x128xf32> to vector<8x96xf32>
    %cst_40 = arith.constant 5.000000e-01 : f32
    %127 = vector.broadcast %cst_40 : f32 to vector<8x96xf32>
    %128 = arith.mulf %127, %126 : vector<8x96xf32>
    %cst_41 = arith.constant 5.000000e-01 : f32
    %129 = vector.broadcast %cst_41 : f32 to vector<8x96xf32>
    %130 = arith.addf %128, %129 : vector<8x96xf32>
    %131 = vector.extract_strided_slice %130 {offsets = [0, 0], sizes = [8, 32], strides = [1, 1]} : vector<8x96xf32> to vector<8x32xf32>
    %132 = vector.extract_strided_slice %130 {offsets = [0, 32], sizes = [8, 32], strides = [1, 1]} : vector<8x96xf32> to vector<8x32xf32>
    %133 = vector.extract_strided_slice %130 {offsets = [0, 64], sizes = [8, 32], strides = [1, 1]} : vector<8x96xf32> to vector<8x32xf32>
    %134 = vector.extract_strided_slice %125 {offsets = [0, 96], sizes = [8, 32], strides = [1, 1]} : vector<8x128xf32> to vector<8x32xf32>
    %135 = arith.mulf %132, %118 : vector<8x32xf32>
    %136 = arith.mulf %131, %134 : vector<8x32xf32>
    %137 = arith.addf %135, %136 : vector<8x32xf32>
    %138 = math.tanh %137 : vector<8x32xf32>
    %139 = arith.mulf %133, %138 : vector<8x32xf32>
    %140 = vector.extract_strided_slice %17 {offsets = [48, 0], sizes = [8, 128], strides = [1, 1]} : vector<64x128xf32> to vector<8x128xf32>
    %141 = arith.truncf %139 : vector<8x32xf32> to vector<8x32xbf16>
    %cst_42 = arith.constant dense<0.000000e+00> : vector<8x128xf32>
    %142 = tpu.matmul %141, %0, %cst_42 {dimension_numbers = #tpu.dot_dimension_numbers<[1], [0], [0], [1], [0, 0, 1, 1], [], []>} : vector<8x32xbf16>, vector<32x128xbf16>, vector<8x128xf32> -> vector<8x128xf32>
    %143 = arith.addf %140, %142 : vector<8x128xf32>
    %144 = math.tanh %143 : vector<8x128xf32>
    %145 = vector.extract_strided_slice %144 {offsets = [0, 0], sizes = [8, 96], strides = [1, 1]} : vector<8x128xf32> to vector<8x96xf32>
    %cst_43 = arith.constant 5.000000e-01 : f32
    %146 = vector.broadcast %cst_43 : f32 to vector<8x96xf32>
    %147 = arith.mulf %146, %145 : vector<8x96xf32>
    %cst_44 = arith.constant 5.000000e-01 : f32
    %148 = vector.broadcast %cst_44 : f32 to vector<8x96xf32>
    %149 = arith.addf %147, %148 : vector<8x96xf32>
    %150 = vector.extract_strided_slice %149 {offsets = [0, 0], sizes = [8, 32], strides = [1, 1]} : vector<8x96xf32> to vector<8x32xf32>
    %151 = vector.extract_strided_slice %149 {offsets = [0, 32], sizes = [8, 32], strides = [1, 1]} : vector<8x96xf32> to vector<8x32xf32>
    %152 = vector.extract_strided_slice %149 {offsets = [0, 64], sizes = [8, 32], strides = [1, 1]} : vector<8x96xf32> to vector<8x32xf32>
    %153 = vector.extract_strided_slice %144 {offsets = [0, 96], sizes = [8, 32], strides = [1, 1]} : vector<8x128xf32> to vector<8x32xf32>
    %154 = arith.mulf %151, %137 : vector<8x32xf32>
    %155 = arith.mulf %150, %153 : vector<8x32xf32>
    %156 = arith.addf %154, %155 : vector<8x32xf32>
    %157 = math.tanh %156 : vector<8x32xf32>
    %158 = arith.mulf %152, %157 : vector<8x32xf32>
    %159 = vector.extract_strided_slice %17 {offsets = [56, 0], sizes = [8, 128], strides = [1, 1]} : vector<64x128xf32> to vector<8x128xf32>
    %160 = arith.truncf %158 : vector<8x32xf32> to vector<8x32xbf16>
    %cst_45 = arith.constant dense<0.000000e+00> : vector<8x128xf32>
    %161 = tpu.matmul %160, %0, %cst_45 {dimension_numbers = #tpu.dot_dimension_numbers<[1], [0], [0], [1], [0, 0, 1, 1], [], []>} : vector<8x32xbf16>, vector<32x128xbf16>, vector<8x128xf32> -> vector<8x128xf32>
    %162 = arith.addf %159, %161 : vector<8x128xf32>
    %163 = math.tanh %162 : vector<8x128xf32>
    %164 = vector.extract_strided_slice %163 {offsets = [0, 0], sizes = [8, 96], strides = [1, 1]} : vector<8x128xf32> to vector<8x96xf32>
    %cst_46 = arith.constant 5.000000e-01 : f32
    %165 = vector.broadcast %cst_46 : f32 to vector<8x96xf32>
    %166 = arith.mulf %165, %164 : vector<8x96xf32>
    %cst_47 = arith.constant 5.000000e-01 : f32
    %167 = vector.broadcast %cst_47 : f32 to vector<8x96xf32>
    %168 = arith.addf %166, %167 : vector<8x96xf32>
    %169 = vector.extract_strided_slice %168 {offsets = [0, 0], sizes = [8, 32], strides = [1, 1]} : vector<8x96xf32> to vector<8x32xf32>
    %170 = vector.extract_strided_slice %168 {offsets = [0, 32], sizes = [8, 32], strides = [1, 1]} : vector<8x96xf32> to vector<8x32xf32>
    %171 = vector.extract_strided_slice %168 {offsets = [0, 64], sizes = [8, 32], strides = [1, 1]} : vector<8x96xf32> to vector<8x32xf32>
    %172 = vector.extract_strided_slice %163 {offsets = [0, 96], sizes = [8, 32], strides = [1, 1]} : vector<8x128xf32> to vector<8x32xf32>
    %173 = arith.mulf %170, %156 : vector<8x32xf32>
    %174 = arith.mulf %169, %172 : vector<8x32xf32>
    %175 = arith.addf %173, %174 : vector<8x32xf32>
    %176 = math.tanh %175 : vector<8x32xf32>
    %177 = arith.mulf %171, %176 : vector<8x32xf32>
    %178 = arith.truncf %177 : vector<8x32xf32> to vector<8x32xbf16>
    %c0_48 = arith.constant 0 : index
    %c0_49 = arith.constant 0 : index
    %179 = vector.load %arg8[%c0_48, %c0_49] : memref<32x256xbf16, #tpu.memory_space<vmem>>, vector<32x256xbf16>
    %cst_50 = arith.constant dense<0.000000e+00> : vector<8x256xf32>
    %180 = tpu.matmul %178, %179, %cst_50 {dimension_numbers = #tpu.dot_dimension_numbers<[1], [0], [0], [1], [0, 0, 1, 1], [], []>} : vector<8x32xbf16>, vector<32x256xbf16>, vector<8x256xf32> -> vector<8x256xf32>
    %181 = vector.extract_strided_slice %180 {offsets = [0, 128], sizes = [8, 128], strides = [1, 1]} : vector<8x256xf32> to vector<8x128xf32>
    %c0_51 = arith.constant 0 : index
    %c0_52 = arith.constant 0 : index
    %182 = vector.load %arg9[%c0_51, %c0_52] : memref<1x128xf32, #tpu.memory_space<vmem>>, vector<1x128xf32>
    %183 = vector.broadcast %182 : vector<1x128xf32> to vector<8x128xf32>
    %184 = arith.addf %181, %183 : vector<8x128xf32>
    %c0_53 = arith.constant 0 : index
    %c0_54 = arith.constant 0 : index
    %185 = vector.load %arg15[%c0_53, %c0_54] : memref<8x128xf32, #tpu.memory_space<vmem>>, vector<8x128xf32>
    tpu.vector_store %arg15[%c0_53, %c0_54], %184 {strides = array<i32>} : memref<8x128xf32, #tpu.memory_space<vmem>>, vector<8x128xf32>,
    %186 = vector.extract_strided_slice %180 {offsets = [0, 0], sizes = [8, 128], strides = [1, 1]} : vector<8x256xf32> to vector<8x128xf32>
    %187 = arith.addf %23, %186 : vector<8x128xf32>
    %188 = math.tanh %187 : vector<8x128xf32>
    %189 = vector.extract_strided_slice %188 {offsets = [0, 0], sizes = [8, 96], strides = [1, 1]} : vector<8x128xf32> to vector<8x96xf32>
    %cst_55 = arith.constant 5.000000e-01 : f32
    %190 = vector.broadcast %cst_55 : f32 to vector<8x96xf32>
    %191 = arith.mulf %190, %189 : vector<8x96xf32>
    %cst_56 = arith.constant 5.000000e-01 : f32
    %192 = vector.broadcast %cst_56 : f32 to vector<8x96xf32>
    %193 = arith.addf %191, %192 : vector<8x96xf32>
    %194 = vector.extract_strided_slice %193 {offsets = [0, 0], sizes = [8, 32], strides = [1, 1]} : vector<8x96xf32> to vector<8x32xf32>
    %195 = vector.extract_strided_slice %193 {offsets = [0, 32], sizes = [8, 32], strides = [1, 1]} : vector<8x96xf32> to vector<8x32xf32>
    %196 = vector.extract_strided_slice %193 {offsets = [0, 64], sizes = [8, 32], strides = [1, 1]} : vector<8x96xf32> to vector<8x32xf32>
    %197 = vector.extract_strided_slice %188 {offsets = [0, 96], sizes = [8, 32], strides = [1, 1]} : vector<8x128xf32> to vector<8x32xf32>
    %198 = arith.mulf %195, %175 : vector<8x32xf32>
    %199 = arith.mulf %194, %197 : vector<8x32xf32>
    %200 = arith.addf %198, %199 : vector<8x32xf32>
    %201 = math.tanh %200 : vector<8x32xf32>
    %202 = arith.mulf %196, %201 : vector<8x32xf32>
    %c0_57 = arith.constant 0 : index
    %c0_58 = arith.constant 0 : index
    %203 = vector.load %arg16[%c0_57, %c0_58] : memref<64x32xf32, #tpu.memory_space<vmem>>, vector<8x32xf32>
    tpu.vector_store %arg16[%c0_57, %c0_58], %202 {strides = array<i32>} : memref<64x32xf32, #tpu.memory_space<vmem>>, vector<8x32xf32>,
    %204 = arith.truncf %202 : vector<8x32xf32> to vector<8x32xbf16>
    %cst_59 = arith.constant dense<0.000000e+00> : vector<8x128xf32>
    %205 = tpu.matmul %204, %1, %cst_59 {dimension_numbers = #tpu.dot_dimension_numbers<[1], [0], [0], [1], [0, 0, 1, 1], [], []>} : vector<8x32xbf16>, vector<32x128xbf16>, vector<8x128xf32> -> vector<8x128xf32>
    %206 = arith.addf %205, %4 : vector<8x128xf32>
    %207 = math.tanh %206 : vector<8x128xf32>
    %208 = vector.extract_strided_slice %207 {offsets = [0, 0], sizes = [8, 96], strides = [1, 1]} : vector<8x128xf32> to vector<8x96xf32>
    %cst_60 = arith.constant 5.000000e-01 : f32
    %209 = vector.broadcast %cst_60 : f32 to vector<8x96xf32>
    %210 = arith.mulf %209, %208 : vector<8x96xf32>
    %cst_61 = arith.constant 5.000000e-01 : f32
    %211 = vector.broadcast %cst_61 : f32 to vector<8x96xf32>
    %212 = arith.addf %210, %211 : vector<8x96xf32>
    %213 = vector.extract_strided_slice %212 {offsets = [0, 0], sizes = [8, 32], strides = [1, 1]} : vector<8x96xf32> to vector<8x32xf32>
    %214 = vector.extract_strided_slice %212 {offsets = [0, 32], sizes = [8, 32], strides = [1, 1]} : vector<8x96xf32> to vector<8x32xf32>
    %215 = vector.extract_strided_slice %212 {offsets = [0, 64], sizes = [8, 32], strides = [1, 1]} : vector<8x96xf32> to vector<8x32xf32>
    %216 = vector.extract_strided_slice %207 {offsets = [0, 96], sizes = [8, 32], strides = [1, 1]} : vector<8x128xf32> to vector<8x32xf32>
    %217 = arith.mulf %214, %200 : vector<8x32xf32>
    %218 = arith.mulf %213, %216 : vector<8x32xf32>
    %219 = arith.addf %217, %218 : vector<8x32xf32>
    %220 = math.tanh %219 : vector<8x32xf32>
    %221 = arith.mulf %215, %220 : vector<8x32xf32>
    %c8 = arith.constant 8 : index
    %c0_62 = arith.constant 0 : index
    %222 = vector.load %arg16[%c8, %c0_62] : memref<64x32xf32, #tpu.memory_space<vmem>>, vector<8x32xf32>
    tpu.vector_store %arg16[%c8, %c0_62], %221 {strides = array<i32>} : memref<64x32xf32, #tpu.memory_space<vmem>>, vector<8x32xf32>,
    %223 = arith.truncf %221 : vector<8x32xf32> to vector<8x32xbf16>
    %cst_63 = arith.constant dense<0.000000e+00> : vector<8x128xf32>
    %224 = tpu.matmul %223, %1, %cst_63 {dimension_numbers = #tpu.dot_dimension_numbers<[1], [0], [0], [1], [0, 0, 1, 1], [], []>} : vector<8x32xbf16>, vector<32x128xbf16>, vector<8x128xf32> -> vector<8x128xf32>
    %225 = arith.addf %224, %4 : vector<8x128xf32>
    %226 = math.tanh %225 : vector<8x128xf32>
    %227 = vector.extract_strided_slice %226 {offsets = [0, 0], sizes = [8, 96], strides = [1, 1]} : vector<8x128xf32> to vector<8x96xf32>
    %cst_64 = arith.constant 5.000000e-01 : f32
    %228 = vector.broadcast %cst_64 : f32 to vector<8x96xf32>
    %229 = arith.mulf %228, %227 : vector<8x96xf32>
    %cst_65 = arith.constant 5.000000e-01 : f32
    %230 = vector.broadcast %cst_65 : f32 to vector<8x96xf32>
    %231 = arith.addf %229, %230 : vector<8x96xf32>
    %232 = vector.extract_strided_slice %231 {offsets = [0, 0], sizes = [8, 32], strides = [1, 1]} : vector<8x96xf32> to vector<8x32xf32>
    %233 = vector.extract_strided_slice %231 {offsets = [0, 32], sizes = [8, 32], strides = [1, 1]} : vector<8x96xf32> to vector<8x32xf32>
    %234 = vector.extract_strided_slice %231 {offsets = [0, 64], sizes = [8, 32], strides = [1, 1]} : vector<8x96xf32> to vector<8x32xf32>
    %235 = vector.extract_strided_slice %226 {offsets = [0, 96], sizes = [8, 32], strides = [1, 1]} : vector<8x128xf32> to vector<8x32xf32>
    %236 = arith.mulf %233, %219 : vector<8x32xf32>
    %237 = arith.mulf %232, %235 : vector<8x32xf32>
    %238 = arith.addf %236, %237 : vector<8x32xf32>
    %239 = math.tanh %238 : vector<8x32xf32>
    %240 = arith.mulf %234, %239 : vector<8x32xf32>
    %c16 = arith.constant 16 : index
    %c0_66 = arith.constant 0 : index
    %241 = vector.load %arg16[%c16, %c0_66] : memref<64x32xf32, #tpu.memory_space<vmem>>, vector<8x32xf32>
    tpu.vector_store %arg16[%c16, %c0_66], %240 {strides = array<i32>} : memref<64x32xf32, #tpu.memory_space<vmem>>, vector<8x32xf32>,
    %242 = arith.truncf %240 : vector<8x32xf32> to vector<8x32xbf16>
    %cst_67 = arith.constant dense<0.000000e+00> : vector<8x128xf32>
    %243 = tpu.matmul %242, %1, %cst_67 {dimension_numbers = #tpu.dot_dimension_numbers<[1], [0], [0], [1], [0, 0, 1, 1], [], []>} : vector<8x32xbf16>, vector<32x128xbf16>, vector<8x128xf32> -> vector<8x128xf32>
    %244 = arith.addf %243, %4 : vector<8x128xf32>
    %245 = math.tanh %244 : vector<8x128xf32>
    %246 = vector.extract_strided_slice %245 {offsets = [0, 0], sizes = [8, 96], strides = [1, 1]} : vector<8x128xf32> to vector<8x96xf32>
    %cst_68 = arith.constant 5.000000e-01 : f32
    %247 = vector.broadcast %cst_68 : f32 to vector<8x96xf32>
    %248 = arith.mulf %247, %246 : vector<8x96xf32>
    %cst_69 = arith.constant 5.000000e-01 : f32
    %249 = vector.broadcast %cst_69 : f32 to vector<8x96xf32>
    %250 = arith.addf %248, %249 : vector<8x96xf32>
    %251 = vector.extract_strided_slice %250 {offsets = [0, 0], sizes = [8, 32], strides = [1, 1]} : vector<8x96xf32> to vector<8x32xf32>
    %252 = vector.extract_strided_slice %250 {offsets = [0, 32], sizes = [8, 32], strides = [1, 1]} : vector<8x96xf32> to vector<8x32xf32>
    %253 = vector.extract_strided_slice %250 {offsets = [0, 64], sizes = [8, 32], strides = [1, 1]} : vector<8x96xf32> to vector<8x32xf32>
    %254 = vector.extract_strided_slice %245 {offsets = [0, 96], sizes = [8, 32], strides = [1, 1]} : vector<8x128xf32> to vector<8x32xf32>
    %255 = arith.mulf %252, %238 : vector<8x32xf32>
    %256 = arith.mulf %251, %254 : vector<8x32xf32>
    %257 = arith.addf %255, %256 : vector<8x32xf32>
    %258 = math.tanh %257 : vector<8x32xf32>
    %259 = arith.mulf %253, %258 : vector<8x32xf32>
    %c24 = arith.constant 24 : index
    %c0_70 = arith.constant 0 : index
    %260 = vector.load %arg16[%c24, %c0_70] : memref<64x32xf32, #tpu.memory_space<vmem>>, vector<8x32xf32>
    tpu.vector_store %arg16[%c24, %c0_70], %259 {strides = array<i32>} : memref<64x32xf32, #tpu.memory_space<vmem>>, vector<8x32xf32>,
    %261 = arith.truncf %259 : vector<8x32xf32> to vector<8x32xbf16>
    %cst_71 = arith.constant dense<0.000000e+00> : vector<8x128xf32>
    %262 = tpu.matmul %261, %1, %cst_71 {dimension_numbers = #tpu.dot_dimension_numbers<[1], [0], [0], [1], [0, 0, 1, 1], [], []>} : vector<8x32xbf16>, vector<32x128xbf16>, vector<8x128xf32> -> vector<8x128xf32>
    %263 = arith.addf %262, %4 : vector<8x128xf32>
    %264 = math.tanh %263 : vector<8x128xf32>
    %265 = vector.extract_strided_slice %264 {offsets = [0, 0], sizes = [8, 96], strides = [1, 1]} : vector<8x128xf32> to vector<8x96xf32>
    %cst_72 = arith.constant 5.000000e-01 : f32
    %266 = vector.broadcast %cst_72 : f32 to vector<8x96xf32>
    %267 = arith.mulf %266, %265 : vector<8x96xf32>
    %cst_73 = arith.constant 5.000000e-01 : f32
    %268 = vector.broadcast %cst_73 : f32 to vector<8x96xf32>
    %269 = arith.addf %267, %268 : vector<8x96xf32>
    %270 = vector.extract_strided_slice %269 {offsets = [0, 0], sizes = [8, 32], strides = [1, 1]} : vector<8x96xf32> to vector<8x32xf32>
    %271 = vector.extract_strided_slice %269 {offsets = [0, 32], sizes = [8, 32], strides = [1, 1]} : vector<8x96xf32> to vector<8x32xf32>
    %272 = vector.extract_strided_slice %269 {offsets = [0, 64], sizes = [8, 32], strides = [1, 1]} : vector<8x96xf32> to vector<8x32xf32>
    %273 = vector.extract_strided_slice %264 {offsets = [0, 96], sizes = [8, 32], strides = [1, 1]} : vector<8x128xf32> to vector<8x32xf32>
    %274 = arith.mulf %271, %257 : vector<8x32xf32>
    %275 = arith.mulf %270, %273 : vector<8x32xf32>
    %276 = arith.addf %274, %275 : vector<8x32xf32>
    %277 = math.tanh %276 : vector<8x32xf32>
    %278 = arith.mulf %272, %277 : vector<8x32xf32>
    %c32 = arith.constant 32 : index
    %c0_74 = arith.constant 0 : index
    %279 = vector.load %arg16[%c32, %c0_74] : memref<64x32xf32, #tpu.memory_space<vmem>>, vector<8x32xf32>
    tpu.vector_store %arg16[%c32, %c0_74], %278 {strides = array<i32>} : memref<64x32xf32, #tpu.memory_space<vmem>>, vector<8x32xf32>,
    %280 = arith.truncf %278 : vector<8x32xf32> to vector<8x32xbf16>
    %cst_75 = arith.constant dense<0.000000e+00> : vector<8x128xf32>
    %281 = tpu.matmul %280, %1, %cst_75 {dimension_numbers = #tpu.dot_dimension_numbers<[1], [0], [0], [1], [0, 0, 1, 1], [], []>} : vector<8x32xbf16>, vector<32x128xbf16>, vector<8x128xf32> -> vector<8x128xf32>
    %282 = arith.addf %281, %4 : vector<8x128xf32>
    %283 = math.tanh %282 : vector<8x128xf32>
    %284 = vector.extract_strided_slice %283 {offsets = [0, 0], sizes = [8, 96], strides = [1, 1]} : vector<8x128xf32> to vector<8x96xf32>
    %cst_76 = arith.constant 5.000000e-01 : f32
    %285 = vector.broadcast %cst_76 : f32 to vector<8x96xf32>
    %286 = arith.mulf %285, %284 : vector<8x96xf32>
    %cst_77 = arith.constant 5.000000e-01 : f32
    %287 = vector.broadcast %cst_77 : f32 to vector<8x96xf32>
    %288 = arith.addf %286, %287 : vector<8x96xf32>
    %289 = vector.extract_strided_slice %288 {offsets = [0, 0], sizes = [8, 32], strides = [1, 1]} : vector<8x96xf32> to vector<8x32xf32>
    %290 = vector.extract_strided_slice %288 {offsets = [0, 32], sizes = [8, 32], strides = [1, 1]} : vector<8x96xf32> to vector<8x32xf32>
    %291 = vector.extract_strided_slice %288 {offsets = [0, 64], sizes = [8, 32], strides = [1, 1]} : vector<8x96xf32> to vector<8x32xf32>
    %292 = vector.extract_strided_slice %283 {offsets = [0, 96], sizes = [8, 32], strides = [1, 1]} : vector<8x128xf32> to vector<8x32xf32>
    %293 = arith.mulf %290, %276 : vector<8x32xf32>
    %294 = arith.mulf %289, %292 : vector<8x32xf32>
    %295 = arith.addf %293, %294 : vector<8x32xf32>
    %296 = math.tanh %295 : vector<8x32xf32>
    %297 = arith.mulf %291, %296 : vector<8x32xf32>
    %c40 = arith.constant 40 : index
    %c0_78 = arith.constant 0 : index
    %298 = vector.load %arg16[%c40, %c0_78] : memref<64x32xf32, #tpu.memory_space<vmem>>, vector<8x32xf32>
    tpu.vector_store %arg16[%c40, %c0_78], %297 {strides = array<i32>} : memref<64x32xf32, #tpu.memory_space<vmem>>, vector<8x32xf32>,
    %299 = arith.truncf %297 : vector<8x32xf32> to vector<8x32xbf16>
    %cst_79 = arith.constant dense<0.000000e+00> : vector<8x128xf32>
    %300 = tpu.matmul %299, %1, %cst_79 {dimension_numbers = #tpu.dot_dimension_numbers<[1], [0], [0], [1], [0, 0, 1, 1], [], []>} : vector<8x32xbf16>, vector<32x128xbf16>, vector<8x128xf32> -> vector<8x128xf32>
    %301 = arith.addf %300, %4 : vector<8x128xf32>
    %302 = math.tanh %301 : vector<8x128xf32>
    %303 = vector.extract_strided_slice %302 {offsets = [0, 0], sizes = [8, 96], strides = [1, 1]} : vector<8x128xf32> to vector<8x96xf32>
    %cst_80 = arith.constant 5.000000e-01 : f32
    %304 = vector.broadcast %cst_80 : f32 to vector<8x96xf32>
    %305 = arith.mulf %304, %303 : vector<8x96xf32>
    %cst_81 = arith.constant 5.000000e-01 : f32
    %306 = vector.broadcast %cst_81 : f32 to vector<8x96xf32>
    %307 = arith.addf %305, %306 : vector<8x96xf32>
    %308 = vector.extract_strided_slice %307 {offsets = [0, 0], sizes = [8, 32], strides = [1, 1]} : vector<8x96xf32> to vector<8x32xf32>
    %309 = vector.extract_strided_slice %307 {offsets = [0, 32], sizes = [8, 32], strides = [1, 1]} : vector<8x96xf32> to vector<8x32xf32>
    %310 = vector.extract_strided_slice %307 {offsets = [0, 64], sizes = [8, 32], strides = [1, 1]} : vector<8x96xf32> to vector<8x32xf32>
    %311 = vector.extract_strided_slice %302 {offsets = [0, 96], sizes = [8, 32], strides = [1, 1]} : vector<8x128xf32> to vector<8x32xf32>
    %312 = arith.mulf %309, %295 : vector<8x32xf32>
    %313 = arith.mulf %308, %311 : vector<8x32xf32>
    %314 = arith.addf %312, %313 : vector<8x32xf32>
    %315 = math.tanh %314 : vector<8x32xf32>
    %316 = arith.mulf %310, %315 : vector<8x32xf32>
    %c48 = arith.constant 48 : index
    %c0_82 = arith.constant 0 : index
    %317 = vector.load %arg16[%c48, %c0_82] : memref<64x32xf32, #tpu.memory_space<vmem>>, vector<8x32xf32>
    tpu.vector_store %arg16[%c48, %c0_82], %316 {strides = array<i32>} : memref<64x32xf32, #tpu.memory_space<vmem>>, vector<8x32xf32>,
    %318 = arith.truncf %316 : vector<8x32xf32> to vector<8x32xbf16>
    %cst_83 = arith.constant dense<0.000000e+00> : vector<8x128xf32>
    %319 = tpu.matmul %318, %1, %cst_83 {dimension_numbers = #tpu.dot_dimension_numbers<[1], [0], [0], [1], [0, 0, 1, 1], [], []>} : vector<8x32xbf16>, vector<32x128xbf16>, vector<8x128xf32> -> vector<8x128xf32>
    %320 = arith.addf %319, %4 : vector<8x128xf32>
    %321 = math.tanh %320 : vector<8x128xf32>
    %322 = vector.extract_strided_slice %321 {offsets = [0, 0], sizes = [8, 96], strides = [1, 1]} : vector<8x128xf32> to vector<8x96xf32>
    %cst_84 = arith.constant 5.000000e-01 : f32
    %323 = vector.broadcast %cst_84 : f32 to vector<8x96xf32>
    %324 = arith.mulf %323, %322 : vector<8x96xf32>
    %cst_85 = arith.constant 5.000000e-01 : f32
    %325 = vector.broadcast %cst_85 : f32 to vector<8x96xf32>
    %326 = arith.addf %324, %325 : vector<8x96xf32>
    %327 = vector.extract_strided_slice %326 {offsets = [0, 0], sizes = [8, 32], strides = [1, 1]} : vector<8x96xf32> to vector<8x32xf32>
    %328 = vector.extract_strided_slice %326 {offsets = [0, 32], sizes = [8, 32], strides = [1, 1]} : vector<8x96xf32> to vector<8x32xf32>
    %329 = vector.extract_strided_slice %326 {offsets = [0, 64], sizes = [8, 32], strides = [1, 1]} : vector<8x96xf32> to vector<8x32xf32>
    %330 = vector.extract_strided_slice %321 {offsets = [0, 96], sizes = [8, 32], strides = [1, 1]} : vector<8x128xf32> to vector<8x32xf32>
    %331 = arith.mulf %328, %314 : vector<8x32xf32>
    %332 = arith.mulf %327, %330 : vector<8x32xf32>
    %333 = arith.addf %331, %332 : vector<8x32xf32>
    %334 = math.tanh %333 : vector<8x32xf32>
    %335 = arith.mulf %329, %334 : vector<8x32xf32>
    %c56 = arith.constant 56 : index
    %c0_86 = arith.constant 0 : index
    %336 = vector.load %arg16[%c56, %c0_86] : memref<64x32xf32, #tpu.memory_space<vmem>>, vector<8x32xf32>
    tpu.vector_store %arg16[%c56, %c0_86], %335 {strides = array<i32>} : memref<64x32xf32, #tpu.memory_space<vmem>>, vector<8x32xf32>,
    %c0_87 = arith.constant 0 : index
    %c0_88 = arith.constant 0 : index
    %337 = vector.load %arg16[%c0_87, %c0_88] : memref<64x32xf32, #tpu.memory_space<vmem>>, vector<64x32xf32>
    %c0_89 = arith.constant 0 : index
    %c0_90 = arith.constant 0 : index
    %338 = vector.load %arg12[%c0_89, %c0_90] : memref<32x128xf32, #tpu.memory_space<vmem>>, vector<32x128xf32>
    %cst_91 = arith.constant dense<0.000000e+00> : vector<64x128xf32>
    %339 = tpu.matmul %337, %338, %cst_91 {dimension_numbers = #tpu.dot_dimension_numbers<[1], [0], [0], [1], [0, 0, 1, 1], [], []>} : vector<64x32xf32>, vector<32x128xf32>, vector<64x128xf32> -> vector<64x128xf32>
    %c0_92 = arith.constant 0 : index
    %c0_93 = arith.constant 0 : index
    %340 = vector.load %arg13[%c0_92, %c0_93] : memref<1x128xf32, #tpu.memory_space<vmem>>, vector<1x128xf32>
    %341 = vector.broadcast %340 : vector<1x128xf32> to vector<64x128xf32>
    %342 = arith.addf %339, %341 : vector<64x128xf32>
    %c0_94 = arith.constant 0 : index
    %c0_95 = arith.constant 0 : index
    %343 = vector.load %arg14[%c0_94, %c0_95] : memref<64x128xf32, #tpu.memory_space<vmem>>, vector<64x128xf32>
    tpu.vector_store %arg14[%c0_94, %c0_95], %342 {strides = array<i32>} : memref<64x128xf32, #tpu.memory_space<vmem>>, vector<64x128xf32>,
    return
  }
}

</mosaic_0001>

<bundles_post_ra>
// kernel: tpu_custom_call.1
= control target key start
LH: loop header
LB: loop body
LE: loop exit
PB: predicated region body
PF: predicated region fallthrough
CT: control target
= control target key end

     0   :  { %21 = vsyncpa [#allocation4], 0  ;;  %s3102_s0 = inlined_call_operand.vmem [shape: f32[64,2], index: 0, kind: input, shape index: {}]   ;;  %s3103_s1 = inlined_call_operand.hbm [shape: f32[2,32], index: 1, kind: input, shape index: {}]   ;;  %s3104_s2 = inlined_call_operand.hbm [shape: f32[1,32], index: 2, kind: input, shape index: {}]   ;;  %s3105_s3 = inlined_call_operand.vmem [shape: f32[32,128], index: 3, kind: input, shape index: {}]   ;;  %s3106_s4 = inlined_call_operand.hbm [shape: bf16[32,128], index: 4, kind: input, shape index: {}]   ;;  %s3107_s5 = inlined_call_operand.hbm [shape: f32[1,128], index: 5, kind: input, shape index: {}]   ;;  %s3108_s6 = inlined_call_operand.hbm [shape: f32[2,128], index: 6, kind: input, shape index: {}]   ;;  %s3109_s7 = inlined_call_operand.hbm [shape: f32[1,128], index: 7, kind: input, shape index: {}]   ;;  %s3110_s8 = inlined_call_operand.vmem [shape: bf16[32,256], index: 8, kind: input, shape index: {}]   ;;  %s3111_s9 = inlined_call_operand.vmem [shape: f32[1,128], index: 9, kind: input, shape index: {}]   ;;  %s3112_s10 = inlined_call_operand.hbm [shape: bf16[32,128], index: 10, kind: input, shape index: {}]   ;;  %s3113_s11 = inlined_call_operand.vmem [shape: f32[1,128], index: 11, kind: input, shape index: {}]   ;;  %s3114_s12 = inlined_call_operand.vmem [shape: f32[32,128], index: 12, kind: input, shape index: {}]   ;;  %s3115_s13 = inlined_call_operand.vmem [shape: f32[1,128], index: 13, kind: input, shape index: {}]   ;;  %s3116_s14 = inlined_call_operand.hbm [shape: f32[64,128], index: 14, kind: output, shape index: {0}]   ;;  %s3117_s15 = inlined_call_operand.hbm [shape: f32[8,128], index: 15, kind: output, shape index: {1}]  }
   0x1   :  { %22 = vsyncpa [#allocation7], 0 }
   0x2   :  { %23 = vsyncpa [#allocation10], 0 }
   0x3   :  { %24 = vsyncpa [#allocation13], 0 }
   0x4   :  { %25 = vsyncpa [#allocation5], 0 }
   0x5   :  { %26 = vsyncpa [#allocation17], 0  ;;  %s2533_s18 = smov [#allocation6]   ;;  %s2534_s20 = smov [#allocation9]  }
   0x6   :  { %s45_s19 = sshll.u32 %s2533_s18, 4  ;;  %s69_s21 = sshll.u32 %s2534_s20, 4  ;;  %s46_s19 = int_to_ptr.vmem [resolvable:$true] %s45_s19  ;;  %s70_s21 = int_to_ptr.vmem [resolvable:$true] %s69_s21 }
   0x7   :  { %s2323_s24 = scalar_lea.hbm %s3104_s2, 16 }
   0x8   :  { %p2324_p0 = scmp.ne.s32.totalorder %s3104_s2, %s2323_s24  ;;  %p2327_p1 = scmp.lt.u32.totalorder %s2323_s24, %s3104_s2 }
   0xa   :  { %p2329_p2 = pnand %p2327_p1, %p2324_p0 }
   0xc   :  { %2332 = shalt.err (!%p2329_p2)
}
   0xd   :  { %s2333_s29 = scalar_lea.vmem %s46_s19, 16  ;;  %s2337_s30 = scalar_lea.vmem %s46_s19, 32 }
   0xe   :  { %p2334_p3 = scmp.ne.s32.totalorder %s46_s19, %s2333_s29  ;;  %p2338_p4 = scmp.lt.s32.totalorder %s46_s19, %s46_s19 }
   0xf   :  { %p2339_p5 = scmp.lt.s32.totalorder %s2337_s30, %s2333_s29 }
  0x11   :  { %p2340_p6 = por %p2339_p5, %p2338_p4 }
  0x13   :  { %p2341_p7 = pnand %p2340_p6, %p2334_p3 }
  0x15   :  { %2344 = shalt.err (!%p2341_p7)
}
  0x16   :  { %48 = dma.hbm_to_vmem [thread:$0]  %s3104_s2, 16, %s46_s19, [#allocation7]  }
  0x17   :  { %s2345_s22 = scalar_lea.hbm %s3107_s5, 16 }
  0x18   :  { %p2346_p8 = scmp.ne.s32.totalorder %s3107_s5, %s2345_s22  ;;  %p2349_p9 = scmp.lt.u32.totalorder %s2345_s22, %s3107_s5 }
  0x1a   :  { %p2351_p10 = pnand %p2349_p9, %p2346_p8 }
  0x1c   :  { %2354 = shalt.err (!%p2351_p10)
}
  0x1d   :  { %s2355_s27 = scalar_lea.vmem %s70_s21, 16  ;;  %s2359_s28 = scalar_lea.vmem %s70_s21, 32 }
  0x1e   :  { %p2356_p11 = scmp.ne.s32.totalorder %s70_s21, %s2355_s27  ;;  %p2360_p12 = scmp.lt.s32.totalorder %s70_s21, %s70_s21 }
  0x1f   :  { %p2361_p13 = scmp.lt.s32.totalorder %s2359_s28, %s2355_s27 }
  0x21   :  { %p2362_p0 = por %p2361_p13, %p2360_p12 }
  0x23   :  { %p2363_p1 = pnand %p2362_p0, %p2356_p11 }
  0x25   :  { %2366 = shalt.err (!%p2363_p1)
}
  0x26   :  { %72 = dma.hbm_to_vmem [thread:$0]  %s3107_s5, 16, %s70_s21, [#allocation10]  }
  0x27   :  { %s2535_s29 = smov [#allocation12]   ;;  %s2536_s16 = smov [#allocation3]  }
  0x28   :  { %s89_s30 = sshll.u32 %s2535_s29, 4  ;;  %s35_s17 = sshll.u32 %s2536_s16, 4  ;;  %s90_s30 = int_to_ptr.vmem [resolvable:$true] %s89_s30  ;;  %s36_s17 = int_to_ptr.vmem [resolvable:$true] %s35_s17 }
  0x29   :  { %s2367_s22 = scalar_lea.hbm %s3109_s7, 16 }
  0x2a   :  { %p2368_p2 = scmp.ne.s32.totalorder %s3109_s7, %s2367_s22  ;;  %p2371_p3 = scmp.lt.u32.totalorder %s2367_s22, %s3109_s7 }
  0x2c   :  { %p2373_p4 = pnand %p2371_p3, %p2368_p2 }
  0x2e   :  { %2376 = shalt.err (!%p2373_p4)
}
  0x2f   :  { %s2377_s5 = scalar_lea.vmem %s90_s30, 16  ;;  %s2381_s21 = scalar_lea.vmem %s90_s30, 32 }
  0x30   :  { %p2378_p5 = scmp.ne.s32.totalorder %s90_s30, %s2377_s5  ;;  %p2382_p6 = scmp.lt.s32.totalorder %s90_s30, %s90_s30 }
  0x31   :  { %p2383_p7 = scmp.lt.s32.totalorder %s2381_s21, %s2377_s5 }
  0x33   :  { %p2384_p8 = por %p2383_p7, %p2382_p6 }
  0x35   :  { %p2385_p9 = pnand %p2384_p8, %p2378_p5 }
  0x37   :  { %2388 = shalt.err (!%p2385_p9)
}
  0x38   :  { %92 = dma.hbm_to_vmem [thread:$0]  %s3109_s7, 16, %s90_s30, [#allocation13]  }
  0x39   :  { %s2389_s29 = scalar_lea.hbm %s3103_s1, 32 }
  0x3a   :  { %p2390_p10 = scmp.ne.s32.totalorder %s3103_s1, %s2389_s29  ;;  %p2393_p11 = scmp.lt.u32.totalorder %s2389_s29, %s3103_s1 }
  0x3c   :  { %p2395_p12 = pnand %p2393_p11, %p2390_p10 }
  0x3e   :  { %2398 = shalt.err (!%p2395_p12)
}
  0x3f   :  { %s2399_s23 = scalar_lea.vmem %s36_s17, 32  ;;  %p2404_p0 = scmp.lt.s32.totalorder %s36_s17, %s36_s17 }
  0x40   :  { %p2400_p13 = scmp.ne.s32.totalorder %s36_s17, %s2399_s23  ;;  %p2405_p1 = scmp.lt.s32.totalorder %s2399_s23, %s2399_s23 }
  0x42   :  { %p2406_p2 = por %p2405_p1, %p2404_p0 }
  0x44   :  { %p2407_p3 = pnand %p2406_p2, %p2400_p13 }
  0x46   :  { %2410 = shalt.err (!%p2407_p3)
}
  0x47   :  { %38 = dma.hbm_to_vmem [thread:$0]  %s3103_s1, 32, %s36_s17, [#allocation4]  }
  0x48   :  { %s2537_s24 = smov [#allocation8]   ;;  %s2411_s21 = scalar_lea.hbm %s3106_s4, 256 }
  0x49   :  { %s56_s25 = sshll.u32 %s2537_s24, 4  ;;  %p2412_p4 = scmp.ne.s32.totalorder %s3106_s4, %s2411_s21  ;;  %s57_s25 = int_to_ptr.vmem [resolvable:$true] %s56_s25 }
  0x4a   :  { %p2415_p5 = scmp.lt.u32.totalorder %s2411_s21, %s3106_s4 }
  0x4c   :  { %p2417_p6 = pnand %p2415_p5, %p2412_p4 }
  0x4e   :  { %2420 = shalt.err (!%p2417_p6)
}
  0x4f   :  { %s2421_s29 = scalar_lea.vmem %s57_s25, 256  ;;  %p2426_p8 = scmp.lt.s32.totalorder %s57_s25, %s57_s25 }
  0x50   :  { %p2422_p7 = scmp.ne.s32.totalorder %s57_s25, %s2421_s29  ;;  %p2427_p9 = scmp.lt.s32.totalorder %s2421_s29, %s2421_s29 }
  0x52   :  { %p2428_p10 = por %p2427_p9, %p2426_p8 }
  0x54   :  { %p2429_p11 = pnand %p2428_p10, %p2422_p7 }
  0x56   :  { %2432 = shalt.err (!%p2429_p11)
}
  0x57   :  { %s2538_s1 = smov 64   ;;  %s2539_s17 = smov 4  }
  0x58   :  { %62 = dma.hbm_to_vmem [thread:$0]  %s3106_s4, 256, %s57_s25, [#allocation7], %s2538_s1, %s2538_s1, %s2539_s17  }
  0x59   :  { %s2540_s20 = smov [#allocation11]   ;;  %s2541_s23 = smov [#allocation14]  }
  0x5a   :  { %s79_s22 = sshll.u32 %s2540_s20, 4  ;;  %s102_s7 = sshll.u32 %s2541_s23, 4  ;;  %s80_s22 = int_to_ptr.vmem [resolvable:$true] %s79_s22  ;;  %s103_s7 = int_to_ptr.vmem [resolvable:$true] %s102_s7 }
  0x5b   :  { %s2433_s26 = scalar_lea.hbm %s3108_s6, 32 }
  0x5c   :  { %p2434_p12 = scmp.ne.s32.totalorder %s3108_s6, %s2433_s26  ;;  %p2437_p13 = scmp.lt.u32.totalorder %s2433_s26, %s3108_s6 }
  0x5e   :  { %p2439_p0 = pnand %p2437_p13, %p2434_p12 }
  0x60   :  { %2442 = shalt.err (!%p2439_p0)
}
  0x61   :  { %s2443_s4 = scalar_lea.vmem %s80_s22, 32  ;;  %p2448_p2 = scmp.lt.s32.totalorder %s80_s22, %s80_s22 }
  0x62   :  { %p2444_p1 = scmp.ne.s32.totalorder %s80_s22, %s2443_s4  ;;  %p2449_p3 = scmp.lt.s32.totalorder %s2443_s4, %s2443_s4 }
  0x64   :  { %p2450_p4 = por %p2449_p3, %p2448_p2 }
  0x66   :  { %p2451_p5 = pnand %p2450_p4, %p2444_p1 }
  0x68   :  { %2454 = shalt.err (!%p2451_p5)
}
  0x69   :  { %82 = dma.hbm_to_vmem [thread:$0]  %s3108_s6, 32, %s80_s22, [#allocation10]  }
  0x6a   :  { %s2455_s16 = scalar_lea.hbm %s3112_s10, 256 }
  0x6b   :  { %p2456_p6 = scmp.ne.s32.totalorder %s3112_s10, %s2455_s16  ;;  %p2459_p7 = scmp.lt.u32.totalorder %s2455_s16, %s3112_s10 }
  0x6d   :  { %p2461_p8 = pnand %p2459_p7, %p2456_p6 }
  0x6f   :  { %2464 = shalt.err (!%p2461_p8)
}
  0x70   :  { %s2465_s24 = scalar_lea.vmem %s103_s7, 256  ;;  %p2470_p10 = scmp.lt.s32.totalorder %s103_s7, %s103_s7 }
  0x71   :  { %p2466_p9 = scmp.ne.s32.totalorder %s103_s7, %s2465_s24  ;;  %p2471_p11 = scmp.lt.s32.totalorder %s2465_s24, %s2465_s24 }
  0x73   :  { %p2472_p12 = por %p2471_p11, %p2470_p10 }
  0x75   :  { %p2473_p13 = pnand %p2472_p12, %p2466_p9 }
  0x77   :  { %2476 = shalt.err (!%p2473_p13)
}
  0x78   :  { %108 = dma.hbm_to_vmem [thread:$0]  %s3112_s10, 256, %s103_s7, [#allocation13], %s2538_s1, %s2538_s1, %s2539_s17  }
  0x79   :  { %2521 = dma.done.wait [#allocation4], 32  }
  0x7a   :  { %2522 = vsyncadd [#allocation4], 4294967264 }
  0x7b   :  { %2523 = dma.done.wait [#allocation7], 272  }
  0x7c   :  { %2524 = vsyncadd [#allocation7], 4294967024 }
  0x7d   :  { %2525 = dma.done.wait [#allocation10], 48  }
  0x7e   :  { %2526 = vsyncadd [#allocation10], 4294967248 }
  0x7f   :  { %2527 = dma.done.wait [#allocation13], 272  }
  0x80   :  { %2528 = vsyncadd [#allocation13], 4294967024  ;;  %vm193_vm0 = vcmask 1041408   ;;  %vm168_vm1 = vcmask 15360   ;;  %v160_v0 = vld [vmem:[#allocation3] sm:$0x3] }
  0x81   :  { %v152_v1 = vld [vmem:[%s3102_s0] sm:$0xff]  ;;  %v153_v2 = vld [vmem:[%s3102_s0 + $0x8] sm:$0xff]  ;;  %2033 = vmatprep.subr.msk.mxu0 %vm193_vm0, %v160_v0  ;;  %v154_v3 = vld [vmem:[%s3102_s0 + $0x10] sm:$0xff]  ;;  %v2542_v15 = vmov 0.0   ;;  %vm321_vm2 = vcmask 261120   ;;  %vm2543_vm3 = vmmov 0  }
  0x82   :  { %2035 = vmatprep.mubr.msk.f32.mxu0 %vm168_vm1, %v152_v1  ;;  %2034 = vmatpush3.msk.msra.mxu0 %vm193_vm0, %v160_v0  ;;  %v155_v4 = vld [vmem:[%s3102_s0 + $0x18] sm:$0xff]  ;;  %v156_v5 = vld [vmem:[%s3102_s0 + $0x20] sm:$0xff]  ;;  %v311_v7 = vld [vmem:[%s3105_s3 + $0x8] sm:$0xff]  ;;  %v2544_v43 = vmov 0  }
  0x83   :  { %2036 = vmatmul.mubr.msk.f32.vlgmr.msra.gmra.mrb[0].mxu0 %vm168_vm1, %v153_v2  ;;  %v310_v6 = vld [vmem:[%s3105_s3] sm:$0xff]  ;;  %v157_v9 = vld [vmem:[%s3102_s0 + $0x28] sm:$0xff]  ;;  %v158_v10 = vld [vmem:[%s3102_s0 + $0x30] sm:$0xff] }
  0x84   :  { %2038 = vmatprep.mubr.msk.f32.mxu0 %vm168_vm1, %v154_v3  ;;  %v2212_v8 = vpack.c.bf16 %v311_v7, %v310_v6  ;;  %v2759_v11 = vld [vmem:[%s3102_s0 + $0x38] sm:$0xff]  ;;  %v312_v12 = vld [vmem:[%s3105_s3 + $0x10] sm:$0xff]  ;;  %v1898_v16 = vld [vmem:[#allocation6] ss:$0 sm:$0xff]  ;;  %s2545_s0 = smov 32  }
  0x85   :  { %v313_v13 = vld [vmem:[%s3105_s3 + $0x18] sm:$0xff]  ;;  %v2775_v35 = vld [vmem:[#allocation8] sm:$0xff]   ;;  %v2782_v41 = vld [vmem:[#allocation8 + $0x8] sm:$0xff]  }
  0x86   :  { %2213 = vmatprep.subr.bf16.mxu0 %v2212_v8  ;;  %2228 = vmatprep.subr.bf16.mxu1 %v2212_v8  ;;  %v2216_v14 = vpack.c.bf16 %v313_v13, %v312_v12  ;;  %v1908_v44 = vld [vmem:[#allocation9] ss:$0 sm:$0xff] }
  0x87   :  { %2039 = vmatmul.mubr.msk.f32.gmra.mrb[2].mxu0 %vm168_vm1, %v155_v4  ;;  %2230 = vmatpush3.bf16.msra.mxu1 %v2212_v8 }
  0x88   :  { %2041 = vmatprep.mubr.msk.f32.mxu0 %vm168_vm1, %v156_v5  ;;  %2215 = vmatpush3.bf16.msra.mxu0 %v2212_v8 }
  0x89   :  { %2217 = vmatprep.subr.bf16.mxu0 %v2216_v14  ;;  %2229 = vmatprep.subr.bf16.mxu1 %v2216_v14 }
  0x8b   :  { %2042 = vmatmul.mubr.msk.f32.gmra.mrb[4].mxu0 %vm168_vm1, %v157_v9  ;;  %2231 = vmatpush3.bf16.msra.mxu1 %v2216_v14 }
  0x8c   :  { %2044 = vmatprep.mubr.msk.f32.mxu0 %vm168_vm1, %v158_v10  ;;  %2219 = vmatpush3.bf16.msra.mxu0 %v2216_v14  ;;  %v451_v10 = vld [vmem:[#allocation11] sm:$0x3] }
  0x8d   :  { %2072 = vmatprep.subr.bf16.mxu1 %v2542_v15  ;;  %2067 = vmatprep.subr.mxu0 %v2542_v15 }
  0x8f   :  { %2045 = vmatmul.mubr.msk.f32.gmra.mrb[6].mxu0 %vm168_vm1, %v2759_v11 }
 0x156   :  { %v2037_v17 = vpop.f32.mrb[0].mxu0 }
 0x157   :  { %v269_v18 = vadd.f32 %v2037_v17, %v1898_v16  ;;  %v263_v19 = vpop.f32.mrb[1].mxu0 }
 0x158   :  { %v264_v20 = vadd.f32 %v1898_v16, %v263_v19 }
 0x159   :  { %v303_v23 = vmax.f32 %v269_v18, 0.0 }
 0x15a   :  { %v302_v21 = vmax.f32 %v264_v20, 0.0  ;;  %v2040_v22 = vpop.f32.mrb[2].mxu0 }
 0x15b   :  { %v279_v24 = vadd.f32 %v2040_v22, %v1898_v16  ;;  %v273_v25 = vpop.f32.mrb[3].mxu0 }
 0x15c   :  { %v274_v26 = vadd.f32 %v1898_v16, %v273_v25  ;;  %2055 = vmatprep.mubr.msk.f32.mxu0 %vm321_vm2, %v302_v21 }
 0x15d   :  { %2056 = vmatmul.mubr.msk.f32.vlgmr.msra.gmra.mrb[8].mxu0 %vm321_vm2, %v303_v23  ;;  %v305_v29 = vmax.f32 %v279_v24, 0.0 }
 0x15e   :  { %v304_v27 = vmax.f32 %v274_v26, 0.0  ;;  %v2043_v28 = vpop.f32.mrb[4].mxu0  ;;  %2068 = vmatpush3.msk.msra.mxu0 %vm193_vm0, %v451_v10 }
 0x15f   :  { %v289_v30 = vadd.f32 %v2043_v28, %v1898_v16  ;;  %v283_v31 = vpop.f32.mrb[5].mxu0  ;;  %2080 = vmatprep.subr.bf16.mxu0 %v2542_v15 }
 0x160   :  { %v284_v32 = vadd.f32 %v1898_v16, %v283_v31  ;;  %2058 = vmatprep.mubr.msk.f32.mxu0 %vm321_vm2, %v304_v27 }
 0x161   :  { %2059 = vmatmul.mubr.msk.f32.gmra.mrb[10].mxu0 %vm321_vm2, %v305_v29  ;;  %v307_v36 = vmax.f32 %v289_v30, 0.0 }
 0x162   :  { %v306_v33 = vmax.f32 %v284_v32, 0.0  ;;  %v2046_v34 = vpop.f32.mrb[6].mxu0  ;;  %2069 = vmatprep.mubr.msk.f32.mxu0 %vm2543_vm3, %v2542_v15 }
 0x163   :  { %v299_v37 = vadd.f32 %v2046_v34, %v1898_v16  ;;  %v293_v38 = vpop.f32.mrb[7].mxu0 }
 0x164   :  { %v294_v39 = vadd.f32 %v1898_v16, %v293_v38  ;;  %2061 = vmatprep.mubr.msk.f32.mxu1 %vm321_vm2, %v306_v33 }
 0x165   :  { %2062 = vmatmul.mubr.msk.f32.vlgmr.msra.gmra.mrb[0].mxu1 %vm321_vm2, %v307_v36  ;;  %v309_v42 = vmax.f32 %v299_v37, 0.0  ;;  %2070 = vmatmul.mubr.msk.f32.vlgmr.msra.gmra.mrb[12].mxu0 %vm168_vm1, %v2759_v11 }
 0x166   :  { %v308_v40 = vmax.f32 %v294_v39, 0.0  ;;  %2073 = vmatpush3.bf16.msra.mxu1 %v2775_v35  ;;  %2081 = vmatpush3.bf16.msra.mxu0 %v2775_v35 }
 0x167   :  { %2074 = vmatprep.subr.bf16.mxu1 %v2542_v15  ;;  %2084 = vmatprep.mubr.msk.bf16.mxu0 %vm2543_vm3, %v2542_v15 }
 0x168   :  { %2064 = vmatprep.mubr.msk.f32.mxu1 %vm321_vm2, %v308_v40  ;;  %2082 = vmatprep.subr.bf16.mxu0 %v2542_v15 }
 0x169   :  { %2065 = vmatmul.mubr.msk.f32.gmra.mrb[2].mxu1 %vm321_vm2, %v309_v42 }
 0x16a   :  { %2075 = vmatpush3.bf16.msra.mxu1 %v2782_v41  ;;  %2076 = vmatprep.mubr.msk.bf16.mxu1 %vm2543_vm3, %v2542_v15 }
 0x16b   :  { %2088 = vmatprep.subr.bf16.mxu1 %v2542_v15  ;;  %2083 = vmatpush3.bf16.msra.mxu0 %v2782_v41 }
 0x16c   :  { %2096 = vmatprep.subr.bf16.mxu0 %v2542_v15 }
 0x16d   :  { %2077 = vmatmul.mubr.bf16.vlgmr.msra.gmra.mrb[4].mxu1 %v2544_v43 }
 0x16e   :  { %2089 = vmatpush3.bf16.msra.mxu1 %v2775_v35  ;;  %2092 = vmatprep.mubr.msk.bf16.mxu1 %vm2543_vm3, %v2542_v15 }
 0x16f   :  { %2090 = vmatprep.subr.bf16.mxu1 %v2542_v15 }
 0x172   :  { %2091 = vmatpush3.bf16.msra.mxu1 %v2782_v41 }
 0x173   :  { %2104 = vmatprep.subr.bf16.mxu1 %v2542_v15 }
 0x230   :  { %v2057_v45 = vpop.f32.mrb[8].mxu0 }
 0x231   :  { %v418_v46 = vadd.f32 %v2057_v45, %v1908_v44  ;;  %v412_v47 = vpop.f32.mrb[9].mxu0 }
 0x232   :  { %v413_v60 = vadd.f32 %v1908_v44, %v412_v47 }
 0x234   :  { %v2060_v48 = vpop.f32.mrb[10].mxu0 }
 0x235   :  { %v2798_v49 = vadd.f32 %v2060_v48, %v1908_v44  ;;  %v422_v50 = vpop.f32.mrb[11].mxu0 }
 0x236   :  { %v2800_v51 = vadd.f32 %v1908_v44, %v422_v50 }
 0x238   :  { %v2063_v52 = vpop.f32.mrb[0].mxu1  ;;  %v2824_v11 = vpop.f32.mrb[12].mxu0 }
 0x239   :  { %v2802_v53 = vadd.f32 %v2063_v52, %v1908_v44  ;;  %v432_v54 = vpop.f32.mrb[1].mxu1  ;;  %v2071_v17 = vpop.f32.mrb[13].mxu0 }
 0x23a   :  { %v2804_v55 = vadd.f32 %v1908_v44, %v432_v54 }
 0x23c   :  { %v2066_v56 = vpop.f32.mrb[2].mxu1 }
 0x23d   :  { %v2806_v57 = vadd.f32 %v2066_v56, %v1908_v44  ;;  %v442_v58 = vpop.f32.mrb[3].mxu1 }
 0x23e   :  { %v2808_v59 = vadd.f32 %v1908_v44, %v442_v58 }
 0x240   :  { %v581_v61 = vpop.f32.mrb[4].mxu1 }
 0x241   :  { %v587_v62 = vadd.f32 %v581_v61, %v413_v60  ;;  %v2078_v63 = vpop.f32.mrb[5].mxu1 }
 0x242   :  { %v584_v0 = vpop.f32.mrb[6].mxu1 }
 0x243   :  { %2259 = vtanh.f32 %v587_v62  ;;  %v2079_v1 = vpop.f32.mrb[7].mxu1 }
 0x24d   :  { %v2260_v2 = vpop.eup %2259 }
 0x24e   :  { %593 = vrot.lane.b32.xlu0 %v2260_v2, %s2545_s0  ;;  %v589_v3 = vmul.f32 0.5, %v2260_v2 }
 0x250   :  { %v590_v4 = vadd.f32 0.5, %v589_v3 }
 0x252   :  { %v591_v7 = vmul.f32 0.0, %v590_v4 }
 0x2c0   :  { %v594_v5 = vpop.permute.xlu0 %593 }
 0x2c1   :  { %v596_v6 = vmul.f32 %v594_v5, %v590_v4 }
 0x2c3   :  { %598 = vrot.lane.b32.xlu0 %v596_v6, %s2545_s0 }
 0x335   :  { %v599_v8 = vpop.permute.xlu0 %598 }
 0x336   :  { %v601_v9 = vadd.f32 %v599_v8, %v591_v7 }
 0x338   :  { %2261 = vtanh.f32 %v601_v9 }
 0x342   :  { %v2262_v12 = vpop.eup %2261 }
 0x343   :  { %604 = vrot.lane.b32.xlu1 %v2262_v12, %s2545_s0 }
 0x3b5   :  { %v605_v13 = vpop.permute.xlu1 %604 }
 0x3b6   :  { %v607_v14 = vmul.f32 %v605_v13, %v590_v4 }
 0x3b8   :  { %v608_v16 = vpack.c.bf16 %v607_v14, %v607_v14 }
 0x3ba   :  { %610 = vrot.lane.b32.xlu1 %v608_v16, %s2538_s1 }
 0x42c   :  { %v611_v18 = vpop.permute.xlu1 %610 }
 0x42d   :  { %2085 = vmatmul.mubr.msk.bf16.vlgmr.msra.gmra.mrb[16].mxu0 %vm321_vm2, %v611_v18 }
 0x42e   :  { %2097 = vmatpush3.bf16.msra.mxu0 %v2775_v35  ;;  %2100 = vmatprep.mubr.msk.bf16.mxu0 %vm2543_vm3, %v2542_v15 }
 0x42f   :  { %2098 = vmatprep.subr.bf16.mxu0 %v2542_v15 }
 0x432   :  { %2099 = vmatpush3.bf16.msra.mxu0 %v2782_v41 }
 0x433   :  { %2112 = vmatprep.subr.bf16.mxu0 %v2542_v15 }
 0x500   :  { %v649_v19 = vpop.f32.mrb[16].mxu0 }
 0x501   :  { %v655_v20 = vadd.f32 %v649_v19, %v418_v46  ;;  %v2086_v21 = vpop.f32.mrb[17].mxu0 }
 0x502   :  { %v652_v22 = vpop.f32.mrb[18].mxu0 }
 0x503   :  { %2263 = vtanh.f32 %v655_v20  ;;  %v2087_v23 = vpop.f32.mrb[19].mxu0 }
 0x50d   :  { %v2264_v24 = vpop.eup %2263 }
 0x50e   :  { %661 = vrot.lane.b32.xlu0 %v2264_v24, %s2545_s0  ;;  %v657_v25 = vmul.f32 0.5, %v2264_v24 }
 0x510   :  { %v658_v26 = vadd.f32 0.5, %v657_v25 }
 0x512   :  { %v659_v29 = vmul.f32 %v658_v26, %v601_v9 }
 0x580   :  { %v662_v27 = vpop.permute.xlu0 %661 }
 0x581   :  { %v664_v28 = vmul.f32 %v662_v27, %v658_v26 }
 0x583   :  { %666 = vrot.lane.b32.xlu1 %v664_v28, %s2545_s0 }
 0x5f5   :  { %v667_v30 = vpop.permute.xlu1 %666 }
 0x5f6   :  { %v669_v31 = vadd.f32 %v667_v30, %v659_v29 }
 0x5f8   :  { %2265 = vtanh.f32 %v669_v31 }
 0x602   :  { %v2266_v32 = vpop.eup %2265 }
 0x603   :  { %672 = vrot.lane.b32.xlu0 %v2266_v32, %s2545_s0 }
 0x675   :  { %v673_v33 = vpop.permute.xlu0 %672 }
 0x676   :  { %v675_v34 = vmul.f32 %v673_v33, %v658_v26 }
 0x678   :  { %v676_v36 = vpack.c.bf16 %v675_v34, %v675_v34 }
 0x67a   :  { %678 = vrot.lane.b32.xlu1 %v676_v36, %s2538_s1 }
 0x6ec   :  { %v679_v37 = vpop.permute.xlu1 %678 }
 0x6ed   :  { %2093 = vmatmul.mubr.msk.bf16.vlgmr.msra.gmra.mrb[8].mxu1 %vm321_vm2, %v679_v37 }
 0x6ee   :  { %2105 = vmatpush3.bf16.msra.mxu1 %v2775_v35  ;;  %2108 = vmatprep.mubr.msk.bf16.mxu1 %vm2543_vm3, %v2542_v15 }
 0x6ef   :  { %2106 = vmatprep.subr.bf16.mxu1 %v2542_v15 }
 0x6f2   :  { %2107 = vmatpush3.bf16.msra.mxu1 %v2782_v41 }
 0x6f3   :  { %2120 = vmatprep.subr.bf16.mxu1 %v2542_v15 }
 0x7c0   :  { %v717_v38 = vpop.f32.mrb[8].mxu1 }
 0x7c1   :  { %v723_v39 = vadd.f32 %v717_v38, %v2800_v51  ;;  %v2094_v40 = vpop.f32.mrb[9].mxu1 }
 0x7c2   :  { %v720_v42 = vpop.f32.mrb[10].mxu1 }
 0x7c3   :  { %2267 = vtanh.f32 %v723_v39  ;;  %v2095_v44 = vpop.f32.mrb[11].mxu1 }
 0x7cd   :  { %v2268_v45 = vpop.eup %2267 }
 0x7ce   :  { %729 = vrot.lane.b32.xlu0 %v2268_v45, %s2545_s0  ;;  %v725_v46 = vmul.f32 0.5, %v2268_v45 }
 0x7d0   :  { %v726_v47 = vadd.f32 0.5, %v725_v46 }
 0x7d2   :  { %v727_v52 = vmul.f32 %v726_v47, %v669_v31 }
 0x840   :  { %v730_v48 = vpop.permute.xlu0 %729 }
 0x841   :  { %v732_v50 = vmul.f32 %v730_v48, %v726_v47 }
 0x843   :  { %734 = vrot.lane.b32.xlu1 %v732_v50, %s2545_s0 }
 0x8b5   :  { %v735_v54 = vpop.permute.xlu1 %734 }
 0x8b6   :  { %v737_v56 = vadd.f32 %v735_v54, %v727_v52 }
 0x8b8   :  { %2269 = vtanh.f32 %v737_v56 }
 0x8c2   :  { %v2270_v58 = vpop.eup %2269 }
 0x8c3   :  { %740 = vrot.lane.b32.xlu0 %v2270_v58, %s2545_s0 }
 0x935   :  { %v741_v51 = vpop.permute.xlu0 %740 }
 0x936   :  { %v743_v60 = vmul.f32 %v741_v51, %v726_v47 }
 0x938   :  { %v744_v61 = vpack.c.bf16 %v743_v60, %v743_v60 }
 0x93a   :  { %746 = vrot.lane.b32.xlu1 %v744_v61, %s2538_s1 }
 0x9ac   :  { %v747_v62 = vpop.permute.xlu1 %746 }
 0x9ad   :  { %2101 = vmatmul.mubr.msk.bf16.vlgmr.msra.gmra.mrb[20].mxu0 %vm321_vm2, %v747_v62 }
 0x9ae   :  { %2113 = vmatpush3.bf16.msra.mxu0 %v2775_v35  ;;  %2116 = vmatprep.mubr.msk.bf16.mxu0 %vm2543_vm3, %v2542_v15 }
 0x9af   :  { %2114 = vmatprep.subr.bf16.mxu0 %v2542_v15 }
 0x9b2   :  { %2115 = vmatpush3.bf16.msra.mxu0 %v2782_v41 }
 0x9b3   :  { %2128 = vmatprep.subr.bf16.mxu0 %v2542_v15 }
 0xa80   :  { %v785_v63 = vpop.f32.mrb[20].mxu0 }
 0xa81   :  { %v791_v0 = vadd.f32 %v785_v63, %v2798_v49  ;;  %v2102_v1 = vpop.f32.mrb[21].mxu0 }
 0xa82   :  { %v788_v2 = vpop.f32.mrb[22].mxu0 }
 0xa83   :  { %2271 = vtanh.f32 %v791_v0  ;;  %v2103_v3 = vpop.f32.mrb[23].mxu0 }
 0xa8d   :  { %v2272_v4 = vpop.eup %2271 }
 0xa8e   :  { %797 = vrot.lane.b32.xlu0 %v2272_v4, %s2545_s0  ;;  %v793_v5 = vmul.f32 0.5, %v2272_v4 }
 0xa90   :  { %v794_v6 = vadd.f32 0.5, %v793_v5 }
 0xa92   :  { %v795_v9 = vmul.f32 %v794_v6, %v737_v56 }
 0xb00   :  { %v798_v7 = vpop.permute.xlu0 %797 }
 0xb01   :  { %v800_v8 = vmul.f32 %v798_v7, %v794_v6 }
 0xb03   :  { %802 = vrot.lane.b32.xlu1 %v800_v8, %s2545_s0 }
 0xb75   :  { %v803_v10 = vpop.permute.xlu1 %802 }
 0xb76   :  { %v805_v12 = vadd.f32 %v803_v10, %v795_v9 }
 0xb78   :  { %2273 = vtanh.f32 %v805_v12 }
 0xb82   :  { %v2274_v13 = vpop.eup %2273 }
 0xb83   :  { %808 = vrot.lane.b32.xlu0 %v2274_v13, %s2545_s0 }
 0xbf5   :  { %v809_v49 = vpop.permute.xlu0 %808 }
 0xbf6   :  { %v811_v14 = vmul.f32 %v809_v49, %v794_v6 }
 0xbf8   :  { %v812_v16 = vpack.c.bf16 %v811_v14, %v811_v14 }
 0xbfa   :  { %814 = vrot.lane.b32.xlu1 %v812_v16, %s2538_s1 }
 0xc6c   :  { %v815_v17 = vpop.permute.xlu1 %814 }
 0xc6d   :  { %2109 = vmatmul.mubr.msk.bf16.vlgmr.msra.gmra.mrb[12].mxu1 %vm321_vm2, %v815_v17 }
 0xc6e   :  { %2121 = vmatpush3.bf16.msra.mxu1 %v2775_v35  ;;  %2124 = vmatprep.mubr.msk.bf16.mxu1 %vm2543_vm3, %v2542_v15 }
 0xc6f   :  { %2122 = vmatprep.subr.bf16.mxu1 %v2542_v15 }
 0xc72   :  { %2123 = vmatpush3.bf16.msra.mxu1 %v2782_v41 }
 0xd40   :  { %v853_v18 = vpop.f32.mrb[12].mxu1 }
 0xd41   :  { %v859_v19 = vadd.f32 %v853_v18, %v2804_v55  ;;  %v2110_v20 = vpop.f32.mrb[13].mxu1 }
 0xd42   :  { %v856_v21 = vpop.f32.mrb[14].mxu1 }
 0xd43   :  { %2275 = vtanh.f32 %v859_v19  ;;  %v2111_v22 = vpop.f32.mrb[15].mxu1 }
 0xd4d   :  { %v2276_v23 = vpop.eup %2275 }
 0xd4e   :  { %865 = vrot.lane.b32.xlu0 %v2276_v23, %s2545_s0  ;;  %v861_v24 = vmul.f32 0.5, %v2276_v23 }
 0xd50   :  { %v862_v25 = vadd.f32 0.5, %v861_v24  ;;  %v2253_v24 = vld [vmem:[%s3110_s8 + $0x4] ss:$8 sps:$4 sm:$0xff]  }
 0xd51   :  { %1115 = vmatprep.subr.bf16.mxu1 %v2253_v24 }
 0xd52   :  { %v863_v28 = vmul.f32 %v862_v25, %v805_v12 }
 0xdc0   :  { %v866_v26 = vpop.permute.xlu0 %865 }
 0xdc1   :  { %v868_v27 = vmul.f32 %v866_v26, %v862_v25  ;;  %v2254_v26 = vld [vmem:[%s3110_s8 + $0x10] ss:$8 sps:$4 sm:$0xff]  }
 0xdc3   :  { %870 = vrot.lane.b32.xlu1 %v868_v27, %s2545_s0 }
 0xe35   :  { %v871_v29 = vpop.permute.xlu1 %870 }
 0xe36   :  { %v873_v30 = vadd.f32 %v871_v29, %v863_v28 }
 0xe38   :  { %2277 = vtanh.f32 %v873_v30 }
 0xe42   :  { %v2278_v31 = vpop.eup %2277 }
 0xe43   :  { %876 = vrot.lane.b32.xlu0 %v2278_v31, %s2545_s0 }
 0xeb5   :  { %v877_v55 = vpop.permute.xlu0 %876 }
 0xeb6   :  { %v879_v32 = vmul.f32 %v877_v55, %v862_v25  ;;  %v2256_v25 = vld [vmem:[%s3110_s8 + $0x14] ss:$8 sps:$4 sm:$0xff]   ;;  %v1917_v55 = vld [vmem:[#allocation12] ss:$0 sm:$0xff] }
 0xeb8   :  { %v880_v33 = vpack.c.bf16 %v879_v32, %v879_v32  ;;  %v529_v32 = vadd.f32 %v1917_v55, %v2824_v11 }
 0xeba   :  { %882 = vrot.lane.b32.xlu1 %v880_v33, %s2538_s1  ;;  %v1934_v33 = vld [vmem:[%s3111_s9] ss:$0 sm:$0xff] }
 0xf2c   :  { %v883_v34 = vpop.permute.xlu1 %882 }
 0xf2d   :  { %2117 = vmatmul.mubr.msk.bf16.vlgmr.msra.gmra.mrb[24].mxu0 %vm321_vm2, %v883_v34 }
 0xf2e   :  { %2129 = vmatpush3.bf16.msra.mxu0 %v2775_v35  ;;  %2132 = vmatprep.mubr.msk.bf16.mxu0 %vm2543_vm3, %v2542_v15 }
 0xf2f   :  { %2130 = vmatprep.subr.bf16.mxu0 %v2542_v15 }
 0xf32   :  { %2131 = vmatpush3.bf16.msra.mxu0 %v2782_v41 }
 0xf33   :  { %2136 = vmatprep.subr.bf16.mxu0 %v2542_v15 }
0x1000   :  { %v921_v36 = vpop.f32.mrb[24].mxu0 }
0x1001   :  { %v927_v37 = vadd.f32 %v921_v36, %v2802_v53  ;;  %v2118_v38 = vpop.f32.mrb[25].mxu0 }
0x1002   :  { %v924_v39 = vpop.f32.mrb[26].mxu0 }
0x1003   :  { %2279 = vtanh.f32 %v927_v37  ;;  %v2119_v40 = vpop.f32.mrb[27].mxu0 }
0x100d   :  { %v2280_v42 = vpop.eup %2279 }
0x100e   :  { %933 = vrot.lane.b32.xlu0 %v2280_v42, %s2545_s0  ;;  %v929_v35 = vmul.f32 0.5, %v2280_v42 }
0x1010   :  { %v930_v44 = vadd.f32 0.5, %v929_v35 }
0x1012   :  { %v931_v47 = vmul.f32 %v930_v44, %v873_v30 }
0x1080   :  { %v934_v45 = vpop.permute.xlu0 %933 }
0x1081   :  { %v936_v46 = vmul.f32 %v934_v45, %v930_v44 }
0x1083   :  { %938 = vrot.lane.b32.xlu1 %v936_v46, %s2545_s0 }
0x10f5   :  { %v939_v41 = vpop.permute.xlu1 %938 }
0x10f6   :  { %v941_v48 = vadd.f32 %v939_v41, %v931_v47 }
0x10f8   :  { %2281 = vtanh.f32 %v941_v48 }
0x1102   :  { %v2282_v50 = vpop.eup %2281 }
0x1103   :  { %944 = vrot.lane.b32.xlu0 %v2282_v50, %s2545_s0  ;;  %v2924_v50 = vld [vmem:[#allocation14 + $0x8] sm:$0xff]  }
0x1175   :  { %v945_v53 = vpop.permute.xlu0 %944 }
0x1176   :  { %v947_v52 = vmul.f32 %v945_v53, %v930_v44 }
0x1178   :  { %v948_v54 = vpack.c.bf16 %v947_v52, %v947_v52 }
0x117a   :  { %950 = vrot.lane.b32.xlu1 %v948_v54, %s2538_s1 }
0x11ec   :  { %v951_v56 = vpop.permute.xlu1 %950 }
0x11ed   :  { %2125 = vmatmul.mubr.msk.bf16.vlgmr.msra.gmra.mrb[16].mxu1 %vm321_vm2, %v951_v56 }
0x11ee   :  { %1147 = vmatprep.mubr.bf16.mxu1 %v2544_v43 }
0x12c0   :  { %v989_v58 = vpop.f32.mrb[16].mxu1 }
0x12c1   :  { %v995_v51 = vadd.f32 %v989_v58, %v2808_v59  ;;  %v2126_v60 = vpop.f32.mrb[17].mxu1 }
0x12c2   :  { %v992_v61 = vpop.f32.mrb[18].mxu1 }
0x12c3   :  { %2283 = vtanh.f32 %v995_v51  ;;  %v2127_v62 = vpop.f32.mrb[19].mxu1  ;;  %v2949_v51 = vld [vmem:[%s3113_s11] ss:$0 sm:$0xff] }
0x12cd   :  { %v2284_v63 = vpop.eup %2283 }
0x12ce   :  { %1001 = vrot.lane.b32.xlu0 %v2284_v63, %s2545_s0  ;;  %v997_v0 = vmul.f32 0.5, %v2284_v63 }
0x12d0   :  { %v998_v1 = vadd.f32 0.5, %v997_v0 }
0x12d2   :  { %v999_v4 = vmul.f32 %v998_v1, %v941_v48  ;;  %v2921_v48 = vld [vmem:[#allocation14] sm:$0xff]  }
0x1340   :  { %v1002_v2 = vpop.permute.xlu0 %1001 }
0x1341   :  { %v1004_v3 = vmul.f32 %v1002_v2, %v998_v1 }
0x1343   :  { %1006 = vrot.lane.b32.xlu1 %v1004_v3, %s2545_s0 }
0x13b5   :  { %v1007_v5 = vpop.permute.xlu1 %1006 }
0x13b6   :  { %v1009_v6 = vadd.f32 %v1007_v5, %v999_v4 }
0x13b8   :  { %2285 = vtanh.f32 %v1009_v6 }
0x13c2   :  { %v2286_v43 = vpop.eup %2285 }
0x13c3   :  { %1012 = vrot.lane.b32.xlu0 %v2286_v43, %s2545_s0 }
0x1435   :  { %v1013_v59 = vpop.permute.xlu0 %1012 }
0x1436   :  { %v1015_v7 = vmul.f32 %v1013_v59, %v998_v1 }
0x1438   :  { %v1016_v8 = vpack.c.bf16 %v1015_v7, %v1015_v7 }
0x143a   :  { %1018 = vrot.lane.b32.xlu1 %v1016_v8, %s2538_s1 }
0x14ac   :  { %v1019_v9 = vpop.permute.xlu1 %1018 }
0x14ad   :  { %2133 = vmatmul.mubr.msk.bf16.vlgmr.msra.gmra.mrb[28].mxu0 %vm321_vm2, %v1019_v9 }
0x14ae   :  { %2140 = vmatprep.mubr.msk.bf16.mxu0 %vm2543_vm3, %v2542_v15  ;;  %2137 = vmatpush3.bf16.msra.mxu0 %v2921_v48 }
0x14af   :  { %2138 = vmatprep.subr.bf16.mxu0 %v2542_v15 }
0x14b2   :  { %2139 = vmatpush3.bf16.msra.mxu0 %v2924_v50 }
0x14b3   :  { %2152 = vmatprep.subr.bf16.mxu0 %v2542_v15 }
0x1580   :  { %v1057_v10 = vpop.f32.mrb[28].mxu0 }
0x1581   :  { %v1063_v12 = vadd.f32 %v1057_v10, %v2806_v57  ;;  %v2134_v13 = vpop.f32.mrb[29].mxu0  ;;  %v2251_v57 = vld [vmem:[%s3110_s8] ss:$8 sps:$4 sm:$0xff]  }
0x1582   :  { %v1060_v49 = vpop.f32.mrb[30].mxu0  ;;  %1116 = vmatpush1.bf16.msra.mxu1 %v2251_v57 }
0x1583   :  { %2287 = vtanh.f32 %v1063_v12  ;;  %v2135_v14 = vpop.f32.mrb[31].mxu0  ;;  %1117 = vmatprep.subr.bf16.mxu1 %v2256_v25 }
0x1586   :  { %1118 = vmatpush1.bf16.msra.mxu1 %v2254_v26 }
0x1587   :  { %2144 = vmatprep.subr.bf16.mxu1 %v2542_v15 }
0x158d   :  { %v2288_v16 = vpop.eup %2287 }
0x158e   :  { %1069 = vrot.lane.b32.xlu0 %v2288_v16, %s2545_s0  ;;  %v1065_v17 = vmul.f32 0.5, %v2288_v16 }
0x1590   :  { %v1066_v18 = vadd.f32 0.5, %v1065_v17 }
0x1592   :  { %v1067_v21 = vmul.f32 %v1066_v18, %v1009_v6 }
0x1600   :  { %v1070_v19 = vpop.permute.xlu0 %1069 }
0x1601   :  { %v1072_v20 = vmul.f32 %v1070_v19, %v1066_v18 }
0x1603   :  { %1074 = vrot.lane.b32.xlu1 %v1072_v20, %s2545_s0 }
0x1675   :  { %v1075_v22 = vpop.permute.xlu1 %1074 }
0x1676   :  { %v1077_v23 = vadd.f32 %v1075_v22, %v1067_v21 }
0x1678   :  { %2289 = vtanh.f32 %v1077_v23 }
0x1682   :  { %v2290_v27 = vpop.eup %2289 }
0x1683   :  { %1080 = vrot.lane.b32.xlu0 %v2290_v27, %s2545_s0 }
0x16f5   :  { %v1081_v28 = vpop.permute.xlu0 %1080 }
0x16f6   :  { %v1083_v29 = vmul.f32 %v1081_v28, %v1066_v18 }
0x16f8   :  { %v1084_v30 = vpack.c.bf16 %v1083_v29, %v1083_v29 }
0x16fa   :  { %1090 = vrot.lane.b32.xlu1 %v1084_v30, %s2538_s1 }
0x176c   :  { %v1091_v31 = vpop.permute.xlu1 %1090 }
0x176d   :  { %1933 = vmatmul.mubr.msk.bf16.vlgmr.msra.gmra.mrb[20].mxu1 %vm321_vm2, %v1091_v31 }
0x176e   :  { %2148 = vmatprep.mubr.msk.bf16.mxu1 %vm2543_vm3, %v2542_v15  ;;  %2145 = vmatpush3.bf16.msra.mxu1 %v2921_v48 }
0x176f   :  { %2146 = vmatprep.subr.bf16.mxu1 %v2542_v15 }
0x1772   :  { %2147 = vmatpush3.bf16.msra.mxu1 %v2924_v50 }
0x1773   :  { %2160 = vmatprep.subr.bf16.mxu1 %v2542_v15 }
0x1840   :  { %v1149_v34 = vpop.f32.mrb[20].mxu1 }
0x1841   :  { %v1165_v36 = vadd.f32 %v1149_v34, %v529_v32  ;;  %v1151_v37 = vpop.f32.mrb[21].mxu1 }
0x1842   :  { %v1163_v38 = vadd.f32 %v1934_v33, %v1151_v37  ;;  %v1153_v39 = vpop.f32.mrb[22].mxu1 }
0x1843   :  { %2291 = vtanh.f32 %v1165_v36  ;;  %v1154_v40 = vpop.f32.mrb[23].mxu1 }
0x1844   :  { %1164 = vst [vmem:[#allocation16] sm:$0xff] %v1163_v38 }
0x184d   :  { %v2292_v42 = vpop.eup %2291 }
0x184e   :  { %1171 = vrot.lane.b32.xlu0 %v2292_v42, %s2545_s0  ;;  %v1167_v35 = vmul.f32 0.5, %v2292_v42 }
0x1850   :  { %v1168_v44 = vadd.f32 0.5, %v1167_v35 }
0x1852   :  { %v1169_v11 = vmul.f32 %v1168_v44, %v1077_v23 }
0x18c0   :  { %v1172_v45 = vpop.permute.xlu0 %1171 }
0x18c1   :  { %v1174_v46 = vmul.f32 %v1172_v45, %v1168_v44 }
0x18c3   :  { %1176 = vrot.lane.b32.xlu1 %v1174_v46, %s2545_s0 }
0x1935   :  { %v1177_v47 = vpop.permute.xlu1 %1176 }
0x1936   :  { %v1179_v41 = vadd.f32 %v1177_v47, %v1169_v11 }
0x1938   :  { %2293 = vtanh.f32 %v1179_v41 }
0x1942   :  { %v2294_v53 = vpop.eup %2293 }
0x1943   :  { %1182 = vrot.lane.b32.xlu0 %v2294_v53, %s2545_s0 }
0x19b5   :  { %v1183_v52 = vpop.permute.xlu0 %1182 }
0x19b6   :  { %v2934_v54 = vmul.f32 %v1183_v52, %v1168_v44 }
0x19b8   :  { %v1191_v56 = vpack.c.bf16 %v2934_v54, %v2934_v54 }
0x19ba   :  { %1193 = vrot.lane.b32.xlu1 %v1191_v56, %s2538_s1 }
0x1a2c   :  { %v1194_v58 = vpop.permute.xlu1 %1193 }
0x1a2d   :  { %2141 = vmatmul.mubr.msk.bf16.vlgmr.msra.gmra.mrb[32].mxu0 %vm321_vm2, %v1194_v58 }
0x1a2e   :  { %2153 = vmatpush3.bf16.msra.mxu0 %v2921_v48  ;;  %2156 = vmatprep.mubr.msk.bf16.mxu0 %vm2543_vm3, %v2542_v15 }
0x1a2f   :  { %2154 = vmatprep.subr.bf16.mxu0 %v2542_v15 }
0x1a32   :  { %2155 = vmatpush3.bf16.msra.mxu0 %v2924_v50 }
0x1a33   :  { %2168 = vmatprep.subr.bf16.mxu0 %v2542_v15 }
0x1b00   :  { %v1244_v60 = vpop.f32.mrb[32].mxu0 }
0x1b01   :  { %v1245_v61 = vadd.f32 %v2949_v51, %v1244_v60  ;;  %v2142_v62 = vpop.f32.mrb[33].mxu0 }
0x1b02   :  { %v1247_v63 = vpop.f32.mrb[34].mxu0 }
0x1b03   :  { %2295 = vtanh.f32 %v1245_v61  ;;  %v2143_v0 = vpop.f32.mrb[35].mxu0 }
0x1b0d   :  { %v2296_v1 = vpop.eup %2295 }
0x1b0e   :  { %1255 = vrot.lane.b32.xlu0 %v2296_v1, %s2545_s0  ;;  %v1251_v2 = vmul.f32 0.5, %v2296_v1 }
0x1b10   :  { %v1252_v3 = vadd.f32 0.5, %v1251_v2 }
0x1b12   :  { %v1253_v6 = vmul.f32 %v1252_v3, %v1179_v41 }
0x1b80   :  { %v1256_v4 = vpop.permute.xlu0 %1255 }
0x1b81   :  { %v1258_v5 = vmul.f32 %v1256_v4, %v1252_v3 }
0x1b83   :  { %1260 = vrot.lane.b32.xlu1 %v1258_v5, %s2545_s0 }
0x1bf5   :  { %v1261_v43 = vpop.permute.xlu1 %1260 }
0x1bf6   :  { %v1263_v59 = vadd.f32 %v1261_v43, %v1253_v6 }
0x1bf8   :  { %2297 = vtanh.f32 %v1263_v59 }
0x1c02   :  { %v2298_v7 = vpop.eup %2297 }
0x1c03   :  { %1266 = vrot.lane.b32.xlu0 %v2298_v7, %s2545_s0 }
0x1c75   :  { %v1267_v8 = vpop.permute.xlu0 %1266 }
0x1c76   :  { %v2955_v9 = vmul.f32 %v1267_v8, %v1252_v3 }
0x1c78   :  { %v1275_v10 = vpack.c.bf16 %v2955_v9, %v2955_v9 }
0x1c7a   :  { %1277 = vrot.lane.b32.xlu1 %v1275_v10, %s2538_s1 }
0x1cec   :  { %v1278_v12 = vpop.permute.xlu1 %1277 }
0x1ced   :  { %2149 = vmatmul.mubr.msk.bf16.vlgmr.msra.gmra.mrb[24].mxu1 %vm321_vm2, %v1278_v12 }
0x1cee   :  { %2161 = vmatpush3.bf16.msra.mxu1 %v2921_v48  ;;  %2164 = vmatprep.mubr.msk.bf16.mxu1 %vm2543_vm3, %v2542_v15 }
0x1cef   :  { %2162 = vmatprep.subr.bf16.mxu1 %v2542_v15 }
0x1cf2   :  { %2163 = vmatpush3.bf16.msra.mxu1 %v2924_v50 }
0x1cf3   :  { %2176 = vmatprep.subr.bf16.mxu1 %v2542_v15 }
0x1dc0   :  { %v1316_v13 = vpop.f32.mrb[24].mxu1 }
0x1dc1   :  { %v1317_v49 = vadd.f32 %v2949_v51, %v1316_v13  ;;  %v2150_v14 = vpop.f32.mrb[25].mxu1 }
0x1dc2   :  { %v1319_v16 = vpop.f32.mrb[26].mxu1 }
0x1dc3   :  { %2299 = vtanh.f32 %v1317_v49  ;;  %v2151_v17 = vpop.f32.mrb[27].mxu1 }
0x1dcd   :  { %v2300_v18 = vpop.eup %2299 }
0x1dce   :  { %1327 = vrot.lane.b32.xlu0 %v2300_v18, %s2545_s0  ;;  %v1323_v19 = vmul.f32 0.5, %v2300_v18 }
0x1dd0   :  { %v1324_v20 = vadd.f32 0.5, %v1323_v19 }
0x1dd2   :  { %v1325_v23 = vmul.f32 %v1324_v20, %v1263_v59 }
0x1e40   :  { %v1328_v21 = vpop.permute.xlu0 %1327 }
0x1e41   :  { %v1330_v22 = vmul.f32 %v1328_v21, %v1324_v20 }
0x1e43   :  { %1332 = vrot.lane.b32.xlu1 %v1330_v22, %s2545_s0 }
0x1eb5   :  { %v1333_v57 = vpop.permute.xlu1 %1332 }
0x1eb6   :  { %v1335_v24 = vadd.f32 %v1333_v57, %v1325_v23 }
0x1eb8   :  { %2301 = vtanh.f32 %v1335_v24 }
0x1ec2   :  { %v2302_v25 = vpop.eup %2301 }
0x1ec3   :  { %1338 = vrot.lane.b32.xlu0 %v2302_v25, %s2545_s0 }
0x1f35   :  { %v1339_v26 = vpop.permute.xlu0 %1338 }
0x1f36   :  { %v2971_v27 = vmul.f32 %v1339_v26, %v1324_v20 }
0x1f38   :  { %v1347_v28 = vpack.c.bf16 %v2971_v27, %v2971_v27 }
0x1f3a   :  { %1349 = vrot.lane.b32.xlu1 %v1347_v28, %s2538_s1 }
0x1fac   :  { %v1350_v29 = vpop.permute.xlu1 %1349 }
0x1fad   :  { %2157 = vmatmul.mubr.msk.bf16.vlgmr.msra.gmra.mrb[36].mxu0 %vm321_vm2, %v1350_v29 }
0x1fae   :  { %2169 = vmatpush3.bf16.msra.mxu0 %v2921_v48  ;;  %2172 = vmatprep.mubr.msk.bf16.mxu0 %vm2543_vm3, %v2542_v15 }
0x1faf   :  { %2170 = vmatprep.subr.bf16.mxu0 %v2542_v15 }
0x1fb2   :  { %2171 = vmatpush3.bf16.msra.mxu0 %v2924_v50 }
0x1fb3   :  { %2184 = vmatprep.subr.bf16.mxu0 %v2542_v15 }
0x2080   :  { %v1388_v30 = vpop.f32.mrb[36].mxu0 }
0x2081   :  { %v1389_v31 = vadd.f32 %v2949_v51, %v1388_v30  ;;  %v2158_v55 = vpop.f32.mrb[37].mxu0 }
0x2082   :  { %v1391_v32 = vpop.f32.mrb[38].mxu0 }
0x2083   :  { %2303 = vtanh.f32 %v1389_v31  ;;  %v2159_v33 = vpop.f32.mrb[39].mxu0 }
0x208d   :  { %v2304_v34 = vpop.eup %2303 }
0x208e   :  { %1399 = vrot.lane.b32.xlu0 %v2304_v34, %s2545_s0  ;;  %v1395_v36 = vmul.f32 0.5, %v2304_v34 }
0x2090   :  { %v1396_v37 = vadd.f32 0.5, %v1395_v36 }
0x2092   :  { %v1397_v40 = vmul.f32 %v1396_v37, %v1335_v24 }
0x2100   :  { %v1400_v38 = vpop.permute.xlu0 %1399 }
0x2101   :  { %v1402_v39 = vmul.f32 %v1400_v38, %v1396_v37 }
0x2103   :  { %1404 = vrot.lane.b32.xlu1 %v1402_v39, %s2545_s0 }
0x2175   :  { %v1405_v42 = vpop.permute.xlu1 %1404 }
0x2176   :  { %v1407_v35 = vadd.f32 %v1405_v42, %v1397_v40 }
0x2178   :  { %2305 = vtanh.f32 %v1407_v35 }
0x2182   :  { %v2306_v44 = vpop.eup %2305 }
0x2183   :  { %1410 = vrot.lane.b32.xlu0 %v2306_v44, %s2545_s0 }
0x21f5   :  { %v1411_v45 = vpop.permute.xlu0 %1410 }
0x21f6   :  { %v2987_v46 = vmul.f32 %v1411_v45, %v1396_v37 }
0x21f8   :  { %v1419_v11 = vpack.c.bf16 %v2987_v46, %v2987_v46 }
0x21fa   :  { %1421 = vrot.lane.b32.xlu1 %v1419_v11, %s2538_s1 }
0x226c   :  { %v1422_v47 = vpop.permute.xlu1 %1421 }
0x226d   :  { %2165 = vmatmul.mubr.msk.bf16.vlgmr.msra.gmra.mrb[28].mxu1 %vm321_vm2, %v1422_v47 }
0x226e   :  { %2177 = vmatpush3.bf16.msra.mxu1 %v2921_v48  ;;  %2180 = vmatprep.mubr.msk.bf16.mxu1 %vm2543_vm3, %v2542_v15 }
0x226f   :  { %2178 = vmatprep.subr.bf16.mxu1 %v2542_v15 }
0x2272   :  { %2179 = vmatpush3.bf16.msra.mxu1 %v2924_v50 }
0x2340   :  { %v1460_v41 = vpop.f32.mrb[28].mxu1 }
0x2341   :  { %v1461_v53 = vadd.f32 %v2949_v51, %v1460_v41  ;;  %v2166_v52 = vpop.f32.mrb[29].mxu1 }
0x2342   :  { %v1463_v56 = vpop.f32.mrb[30].mxu1 }
0x2343   :  { %2307 = vtanh.f32 %v1461_v53  ;;  %v2167_v58 = vpop.f32.mrb[31].mxu1 }
0x234d   :  { %v2308_v60 = vpop.eup %2307 }
0x234e   :  { %1471 = vrot.lane.b32.xlu0 %v2308_v60, %s2545_s0  ;;  %v1467_v61 = vmul.f32 0.5, %v2308_v60 }
0x2350   :  { %v1468_v62 = vadd.f32 0.5, %v1467_v61 }
0x2352   :  { %v1469_v1 = vmul.f32 %v1468_v62, %v1407_v35 }
0x23c0   :  { %v1472_v63 = vpop.permute.xlu0 %1471 }
0x23c1   :  { %v1474_v0 = vmul.f32 %v1472_v63, %v1468_v62  ;;  %v1716_v63 = vld [vmem:[%s3114_s12 + $0x8] sm:$0xff] }
0x23c3   :  { %1476 = vrot.lane.b32.xlu1 %v1474_v0, %s2545_s0 }
0x2435   :  { %v1477_v2 = vpop.permute.xlu1 %1476 }
0x2436   :  { %v1479_v3 = vadd.f32 %v1477_v2, %v1469_v1  ;;  %v1718_v1 = vld [vmem:[%s3114_s12 + $0x18] sm:$0xff] }
0x2438   :  { %2309 = vtanh.f32 %v1479_v3 }
0x2442   :  { %v2310_v4 = vpop.eup %2309 }
0x2443   :  { %1482 = vrot.lane.b32.xlu0 %v2310_v4, %s2545_s0 }
0x24b5   :  { %v1483_v5 = vpop.permute.xlu0 %1482 }
0x24b6   :  { %v3002_v6 = vmul.f32 %v1483_v5, %v1468_v62  ;;  %v1715_v62 = vld [vmem:[%s3114_s12] sm:$0xff] }
0x24b8   :  { %v1491_v43 = vpack.c.bf16 %v3002_v6, %v3002_v6 }
0x24ba   :  { %1493 = vrot.lane.b32.xlu1 %v1491_v43, %s2538_s1 }
0x252c   :  { %v1494_v59 = vpop.permute.xlu1 %1493 }
0x252d   :  { %2173 = vmatmul.mubr.msk.bf16.vlgmr.msra.gmra.mrb[40].mxu0 %vm321_vm2, %v1494_v59 }
0x252e   :  { %2185 = vmatpush3.bf16.msra.mxu0 %v2921_v48  ;;  %2188 = vmatprep.mubr.msk.bf16.mxu0 %vm2543_vm3, %v2542_v15 }
0x252f   :  { %2186 = vmatprep.subr.bf16.mxu0 %v2542_v15 }
0x2532   :  { %2187 = vmatpush3.bf16.msra.mxu0 %v2924_v50 }
0x2600   :  { %v1532_v7 = vpop.f32.mrb[40].mxu0 }
0x2601   :  { %v1533_v8 = vadd.f32 %v2949_v51, %v1532_v7  ;;  %v2174_v10 = vpop.f32.mrb[41].mxu0 }
0x2602   :  { %v1535_v12 = vpop.f32.mrb[42].mxu0 }
0x2603   :  { %2311 = vtanh.f32 %v1533_v8  ;;  %v2175_v13 = vpop.f32.mrb[43].mxu0 }
0x260d   :  { %v2312_v49 = vpop.eup %2311 }
0x260e   :  { %1543 = vrot.lane.b32.xlu0 %v2312_v49, %s2545_s0  ;;  %v1539_v14 = vmul.f32 0.5, %v2312_v49 }
0x2610   :  { %v1540_v16 = vadd.f32 0.5, %v1539_v14 }
0x2612   :  { %v1541_v18 = vmul.f32 %v1540_v16, %v1479_v3 }
0x2680   :  { %v1544_v48 = vpop.permute.xlu0 %1543 }
0x2681   :  { %v1546_v17 = vmul.f32 %v1544_v48, %v1540_v16 }
0x2683   :  { %1548 = vrot.lane.b32.xlu1 %v1546_v17, %s2545_s0 }
0x26f5   :  { %v1549_v15 = vpop.permute.xlu1 %1548 }
0x26f6   :  { %v1551_v19 = vadd.f32 %v1549_v15, %v1541_v18 }
0x26f8   :  { %2313 = vtanh.f32 %v1551_v19 }
0x2702   :  { %v2314_v50 = vpop.eup %2313 }
0x2703   :  { %1554 = vrot.lane.b32.xlu0 %v2314_v50, %s2545_s0 }
0x2775   :  { %v1555_v20 = vpop.permute.xlu0 %1554 }
0x2776   :  { %v3017_v21 = vmul.f32 %v1555_v20, %v1540_v16 }
0x2778   :  { %v1563_v22 = vpack.c.bf16 %v3017_v21, %v3017_v21 }
0x277a   :  { %1565 = vrot.lane.b32.xlu1 %v1563_v22, %s2538_s1 }
0x27ec   :  { %v1566_v23 = vpop.permute.xlu1 %1565 }
0x27ed   :  { %2181 = vmatmul.mubr.msk.bf16.vlgmr.msra.gmra.mrb[32].mxu1 %vm321_vm2, %v1566_v23 }
0x28c0   :  { %v1604_v57 = vpop.f32.mrb[32].mxu1 }
0x28c1   :  { %v1605_v24 = vadd.f32 %v2949_v51, %v1604_v57  ;;  %v2182_v25 = vpop.f32.mrb[33].mxu1 }
0x28c2   :  { %v1607_v26 = vpop.f32.mrb[34].mxu1 }
0x28c3   :  { %2315 = vtanh.f32 %v1605_v24  ;;  %v2183_v28 = vpop.f32.mrb[35].mxu1 }
0x28cd   :  { %v2316_v29 = vpop.eup %2315 }
0x28ce   :  { %1615 = vrot.lane.b32.xlu0 %v2316_v29, %s2545_s0  ;;  %v1611_v30 = vmul.f32 0.5, %v2316_v29 }
0x28d0   :  { %v1612_v31 = vadd.f32 0.5, %v1611_v30 }
0x28d2   :  { %v1613_v33 = vmul.f32 %v1612_v31, %v1551_v19 }
0x2940   :  { %v1616_v55 = vpop.permute.xlu0 %1615 }
0x2941   :  { %v1618_v32 = vmul.f32 %v1616_v55, %v1612_v31 }
0x2943   :  { %1620 = vrot.lane.b32.xlu1 %v1618_v32, %s2545_s0 }
0x29b5   :  { %v1621_v34 = vpop.permute.xlu1 %1620 }
0x29b6   :  { %v1623_v36 = vadd.f32 %v1621_v34, %v1613_v33 }
0x29b8   :  { %2317 = vtanh.f32 %v1623_v36 }
0x29c2   :  { %v2318_v37 = vpop.eup %2317 }
0x29c3   :  { %1626 = vrot.lane.b32.xlu0 %v2318_v37, %s2545_s0 }
0x2a35   :  { %v1627_v38 = vpop.permute.xlu0 %1626 }
0x2a36   :  { %v1629_v39 = vmul.f32 %v1627_v38, %v1612_v31 }
0x2a38   :  { %v1635_v40 = vpack.c.bf16 %v1629_v39, %v1629_v39 }
0x2a3a   :  { %1637 = vrot.lane.b32.xlu1 %v1635_v40, %s2538_s1 }
0x2aac   :  { %v1638_v42 = vpop.permute.xlu1 %1637 }
0x2aad   :  { %2189 = vmatmul.mubr.msk.bf16.vlgmr.msra.gmra.mrb[44].mxu0 %vm321_vm2, %v1638_v42 }
0x2b80   :  { %v1676_v35 = vpop.f32.mrb[44].mxu0 }
0x2b81   :  { %v1677_v44 = vadd.f32 %v2949_v51, %v1676_v35  ;;  %v2190_v45 = vpop.f32.mrb[45].mxu0 }
0x2b82   :  { %v1679_v11 = vpop.f32.mrb[46].mxu0 }
0x2b83   :  { %2319 = vtanh.f32 %v1677_v44  ;;  %v2191_v47 = vpop.f32.mrb[47].mxu0 }
0x2b8d   :  { %v2320_v41 = vpop.eup %2319 }
0x2b8e   :  { %1687 = vrot.lane.b32.xlu0 %v2320_v41, %s2545_s0  ;;  %v1683_v53 = vmul.f32 0.5, %v2320_v41 }
0x2b90   :  { %v1684_v52 = vadd.f32 0.5, %v1683_v53 }
0x2b92   :  { %v1685_v51 = vmul.f32 %v1684_v52, %v1623_v36 }
0x2c00   :  { %v1688_v56 = vpop.permute.xlu0 %1687 }
0x2c01   :  { %v1690_v58 = vmul.f32 %v1688_v56, %v1684_v52 }
0x2c03   :  { %1692 = vrot.lane.b32.xlu1 %v1690_v58, %s2545_s0 }
0x2c07   :  { %1187 = vrot.lane.b32.xlu1 %v2934_v54, %s2538_s1  ;;  %v2220_v54 = vpack.c.bf16 %v1716_v63, %v1715_v62 }
0x2c09   :  { %2221 = vmatprep.subr.bf16.mxu1 %v2220_v54 }
0x2c0a   :  { %2223 = vmatpush3.bf16.msra.mxu1 %v2220_v54 }
0x2c0b   :  { %1343 = vrot.lane.b32.xlu1 %v2971_v27, %s2538_s1  ;;  %v1717_v27 = vld [vmem:[%s3114_s12 + $0x10] sm:$0xff]  ;;  %s2546_s12 = smov [#allocation16]  }
0x2c0c   :  { %v2224_v2 = vpack.c.bf16 %v1718_v1, %v1717_v27 }
0x2c0e   :  { %2225 = vmatprep.subr.bf16.mxu1 %v2224_v2 }
0x2c0f   :  { %1487 = vrot.lane.b32.xlu1 %v3002_v6, %s2538_s1  ;;  %2227 = vmatpush3.bf16.msra.mxu1 %v2224_v2 }
0x2c13   :  { %1631 = vrot.lane.b32.xlu1 %v1629_v39, %s2538_s1 }
0x2c75   :  { %v1693_v60 = vpop.permute.xlu1 %1692 }
0x2c76   :  { %v1695_v61 = vadd.f32 %v1693_v60, %v1685_v51 }
0x2c78   :  { %2321 = vtanh.f32 %v1695_v61 }
0x2c79   :  { %v1188_v0 = vpop.permute.xlu1 %1187 }
0x2c7a   :  { %1190 = vst.msk [vmem:[#allocation2] sm:$0xff] %vm321_vm2, %v1188_v0 }
0x2c7d   :  { %v1344_v3 = vpop.permute.xlu1 %1343 }
0x2c7e   :  { %1346 = vst.msk [vmem:[#allocation2 + $0x10] sm:$0xff] %vm321_vm2, %v1344_v3 }
0x2c81   :  { %v1488_v4 = vpop.permute.xlu1 %1487  ;;  %v1707_v5 = vld [vmem:[#allocation2] sm:$0xff] }
0x2c82   :  { %v2322_v6 = vpop.eup %2321  ;;  %1490 = vst.msk [vmem:[#allocation2 + $0x20] sm:$0xff] %vm321_vm2, %v1488_v4  ;;  %2200 = vmatprep.mubr.msk.f32.mxu1 %vm321_vm2, %v1707_v5 }
0x2c83   :  { %1698 = vrot.lane.b32.xlu0 %v2322_v6, %s2545_s0 }
0x2c85   :  { %v1632_v43 = vpop.permute.xlu1 %1631 }
0x2c86   :  { %1634 = vst.msk [vmem:[#allocation2 + $0x30] sm:$0xff] %vm321_vm2, %v1632_v43 }
0x2c87   :  { %1271 = vrot.lane.b32.xlu0 %v2955_v9, %s2538_s1  ;;  %v1709_v9 = vld [vmem:[#allocation2 + $0x10] sm:$0xff] }
0x2c89   :  { %v1711_v49 = vld [vmem:[#allocation2 + $0x20] sm:$0xff] }
0x2c8b   :  { %1415 = vrot.lane.b32.xlu0 %v2987_v46, %s2538_s1 }
0x2c8d   :  { %v1713_v16 = vld [vmem:[#allocation2 + $0x30] sm:$0xff] }
0x2c8f   :  { %1559 = vrot.lane.b32.xlu0 %v3017_v21, %s2538_s1 }
0x2cf5   :  { %v1699_v59 = vpop.permute.xlu0 %1698 }
0x2cf6   :  { %v1701_v7 = vmul.f32 %v1699_v59, %v1684_v52 }
0x2cf8   :  { %1703 = vrot.lane.b32.xlu0 %v1701_v7, %s2538_s1  ;;  %s1881_s1 = sshll.u32 %s2546_s12, 4  ;;  %s1882_s1 = int_to_ptr.vmem [resolvable:$true] %s1881_s1 }
0x2cf9   :  { %v1272_v8 = vpop.permute.xlu0 %1271  ;;  %s2477_s6 = scalar_lea.vmem %s1882_s1, 128  ;;  %p2482_p1 = scmp.lt.s32.totalorder %s1882_s1, %s1882_s1 }
0x2cfa   :  { %1274 = vst.msk [vmem:[#allocation2 + $0x8] sm:$0xff] %vm321_vm2, %v1272_v8  ;;  %p2478_p0 = scmp.ne.s32.totalorder %s1882_s1, %s2477_s6  ;;  %p2483_p2 = scmp.lt.s32.totalorder %s2477_s6, %s2477_s6 }
0x2cfc   :  { %p2484_p3 = por %p2483_p2, %p2482_p1 }
0x2cfd   :  { %v1416_v10 = vpop.permute.xlu0 %1415 }
0x2cfe   :  { %1418 = vst.msk [vmem:[#allocation2 + $0x18] sm:$0xff] %vm321_vm2, %v1416_v10  ;;  %p2485_p4 = pnand %p2484_p3, %p2478_p0 }
0x2d01   :  { %v1560_v12 = vpop.permute.xlu0 %1559  ;;  %v1708_v13 = vld [vmem:[#allocation2 + $0x8] sm:$0xff] }
0x2d02   :  { %1562 = vst.msk [vmem:[#allocation2 + $0x28] sm:$0xff] %vm321_vm2, %v1560_v12  ;;  %2201 = vmatmul.mubr.msk.f32.vlgmr.msra.gmra.mrb[36].mxu1 %vm321_vm2, %v1708_v13 }
0x2d03   :  { %2203 = vmatprep.mubr.msk.f32.mxu1 %vm321_vm2, %v1709_v9 }
0x2d05   :  { %v1710_v46 = vld [vmem:[#allocation2 + $0x18] sm:$0xff] }
0x2d06   :  { %2204 = vmatmul.mubr.msk.f32.gmra.mrb[38].mxu1 %vm321_vm2, %v1710_v46 }
0x2d07   :  { %2206 = vmatprep.mubr.msk.f32.mxu1 %vm321_vm2, %v1711_v49 }
0x2d09   :  { %v1712_v14 = vld [vmem:[#allocation2 + $0x28] sm:$0xff] }
0x2d0a   :  { %2207 = vmatmul.mubr.msk.f32.gmra.mrb[40].mxu1 %vm321_vm2, %v1712_v14 }
0x2d0b   :  { %2209 = vmatprep.mubr.msk.f32.mxu1 %vm321_vm2, %v1713_v16 }
0x2d6a   :  { %v1704_v48 = vpop.permute.xlu0 %1703 }
0x2d6b   :  { %1706 = vst.msk [vmem:[#allocation2 + $0x38] sm:$0xff] %vm321_vm2, %v1704_v48 }
0x2d72   :  { %v1714_v17 = vld [vmem:[#allocation2 + $0x38] sm:$0xff] }
0x2d73   :  { %2210 = vmatmul.mubr.msk.f32.gmra.mrb[42].mxu1 %vm321_vm2, %v1714_v17 }
0x2d74   :  { %2488 = shalt.err (!%p2485_p4)
}
0x2d75   :  { %s2489_s5 = scalar_lea.hbm %s3117_s15, 128 }
0x2d76   :  { %p2490_p5 = scmp.ne.s32.totalorder %s3117_s15, %s2489_s5  ;;  %p2493_p6 = scmp.lt.u32.totalorder %s2489_s5, %s3117_s15 }
0x2d78   :  { %p2495_p7 = pnand %p2493_p6, %p2490_p5 }
0x2d7a   :  { %2498 = shalt.err (!%p2495_p7)
}
0x2d7b   :  { %1884 = dma.vmem_to_hbm [thread:$0]  %s1882_s1, 128, %s3117_s15, [#allocation17]   ;;  %v1944_v18 = vld [vmem:[%s3115_s13] ss:$0 sm:$0xff] }
0x2d7c   :  { %s2547_s15 = smov [#allocation15]  }
0x2d7d   :  { %s1868_s13 = sshll.u32 %s2547_s15, 4  ;;  %s1869_s13 = int_to_ptr.vmem [resolvable:$true] %s1868_s13 }
0x2d7e   :  { %s2499_s4 = scalar_lea.vmem %s1869_s13, 1024  ;;  %p2504_p9 = scmp.lt.s32.totalorder %s1869_s13, %s1869_s13 }
0x2d7f   :  { %p2500_p8 = scmp.ne.s32.totalorder %s1869_s13, %s2499_s4  ;;  %p2505_p10 = scmp.lt.s32.totalorder %s2499_s4, %s2499_s4 }
0x2d81   :  { %p2506_p11 = por %p2505_p10, %p2504_p9 }
0x2d83   :  { %p2507_p12 = pnand %p2506_p11, %p2500_p8 }
0x2dd5   :  { %v2202_v15 = vpop.f32.mrb[36].mxu1 }
0x2dd6   :  { %v1822_v19 = vadd.f32 %v2202_v15, %v1944_v18  ;;  %v1816_v50 = vpop.f32.mrb[37].mxu1 }
0x2dd7   :  { %v1817_v20 = vadd.f32 %v1944_v18, %v1816_v50 }
0x2dd8   :  { %1856 = vst [vmem:[#allocation15 + $0x8] sm:$0xff] %v1822_v19 }
0x2dd9   :  { %1855 = vst [vmem:[#allocation15] sm:$0xff] %v1817_v20  ;;  %v2205_v21 = vpop.f32.mrb[38].mxu1 }
0x2dda   :  { %v1832_v22 = vadd.f32 %v2205_v21, %v1944_v18  ;;  %v1826_v23 = vpop.f32.mrb[39].mxu1 }
0x2ddb   :  { %v1827_v57 = vadd.f32 %v1944_v18, %v1826_v23 }
0x2ddc   :  { %1858 = vst [vmem:[#allocation15 + $0x18] sm:$0xff] %v1832_v22 }
0x2ddd   :  { %1857 = vst [vmem:[#allocation15 + $0x10] sm:$0xff] %v1827_v57  ;;  %v2208_v24 = vpop.f32.mrb[40].mxu1 }
0x2dde   :  { %v1842_v25 = vadd.f32 %v2208_v24, %v1944_v18  ;;  %v1836_v26 = vpop.f32.mrb[41].mxu1 }
0x2ddf   :  { %v1837_v28 = vadd.f32 %v1944_v18, %v1836_v26 }
0x2de0   :  { %1860 = vst [vmem:[#allocation15 + $0x28] sm:$0xff] %v1842_v25 }
0x2de1   :  { %1859 = vst [vmem:[#allocation15 + $0x20] sm:$0xff] %v1837_v28 }
0x2e46   :  { %v2211_v29 = vpop.f32.mrb[42].mxu1 }
0x2e47   :  { %v1852_v30 = vadd.f32 %v2211_v29, %v1944_v18  ;;  %v1846_v31 = vpop.f32.mrb[43].mxu1 }
0x2e48   :  { %v1847_v55 = vadd.f32 %v1944_v18, %v1846_v31 }
0x2e49   :  { %1862 = vst [vmem:[#allocation15 + $0x38] sm:$0xff] %v1852_v30 }
0x2e4a   :  { %1861 = vst [vmem:[#allocation15 + $0x30] sm:$0xff] %v1847_v55 }
0x2e4b   :  { %2510 = shalt.err (!%p2507_p12)
}
0x2e4c   :  { %s2511_s2 = scalar_lea.hbm %s3116_s14, 1024 }
0x2e4d   :  { %p2512_p13 = scmp.ne.s32.totalorder %s3116_s14, %s2511_s2  ;;  %p2515_p0 = scmp.lt.u32.totalorder %s2511_s2, %s3116_s14 }
0x2e4f   :  { %p2517_p1 = pnand %p2515_p0, %p2512_p13 }
0x2e51   :  { %2520 = shalt.err (!%p2517_p1)
}
0x2e52   :  { %s2548_s16 = smov 128   ;;  %s2549_s18 = smov 8  }
0x2e53   :  { %1874 = dma.vmem_to_hbm [thread:$0]  %s1869_s13, 1024, %s3116_s14, [#allocation5], %s2548_s16, %s2548_s16, %s2549_s18  }
0x2e54   :  { %2529 = dma.done.wait [#allocation5], 1024  }
0x2e55   :  { %2530 = vsyncadd [#allocation5], 4294966272 }
0x2e56   :  { %2531 = dma.done.wait [#allocation17], 128  }
0x2e57   :  { %2532 = vsyncadd [#allocation17], 4294967168 }
0x2e58   :  { %1891 = vsyncpa [#allocation4], 1 }
0x2e59   :  { %1892 = vsyncpa [#allocation7], 1 }
0x2e5a   :  { %1893 = vsyncpa [#allocation10], 1 }
0x2e5b   :  { %1894 = vsyncpa [#allocation13], 1 }
0x2e5c   :  { %1895 = vsyncpa [#allocation5], 1 }
0x2e5d   :  { %1896 = vsyncpa [#allocation17], 1 }

</bundles_post_ra>
